<compile_context>
chip_gen: v6e
topology: v6e:2x2x1
jax: 0.10.0
libtpu: 0.0.40
codegen_flags: <defaults>
</compile_context>

<pallas_src>
import jax
import jax.numpy as jnp
from jax import lax
from jax.experimental import pallas as pl
from jax.experimental.pallas import tpu as pltpu


C_IN, C1, C2, C3, C4, C5, C_OUT = 2, 8, 16, 32, 16, 8, 2


# ----------------------------------------------------------------------------
# Fused whole-network kernel (one grid step == one image)
# ----------------------------------------------------------------------------
def _make_kernel(H, W):
    W1, W2, W3 = W, W // 2, W // 4
    H2, H3 = H // 2, H // 4
    Hp2, Wp2 = H2 + 2, W2 + 2
    Hp3, Wp3 = H3 + 2, W3 + 2
    f32, bf16 = jnp.float32, jnp.bfloat16

    def kernel(x_ref,                                   # (H+2, C_IN, W+2) reflect-padded image
               w1_ref, b1_ref, w2_ref, b2_ref, w3_ref, b3_ref,
               wt1_ref, bt1_ref, wt2_ref, bt2_ref, wf_ref, bf_ref,
               out_ref,                                 # (H, C_OUT, W)
               pad2_ref, pad3_ref, padt1_ref, padt2_ref):

        # ---- helpers ------------------------------------------------------
        def _loop(n, body):
            def wrapped(i, carry):
                body(i)
                return carry
            lax.fori_loop(0, n, wrapped, 0)

        def pool_sel(n, odd):                           # (n, n//2) 0/1 matrix
            i = lax.broadcasted_iota(jnp.int32, (n, n // 2), 0)
            j = lax.broadcasted_iota(jnp.int32, (n, n // 2), 1)
            return (i == 2 * j + odd).astype(bf16)

        def interleave(n, phase):                       # (n, 2n) 0/1 matrix
            i = lax.broadcasted_iota(jnp.int32, (n, 2 * n), 0)
            j = lax.broadcasted_iota(jnp.int32, (n, 2 * n), 1)
            return (j == 2 * i + phase).astype(bf16)

        ev1, od1 = pool_sel(W1, 0), pool_sel(W1, 1)
        ev2, od2 = pool_sel(W2, 0), pool_sel(W2, 1)
        il3 = (interleave(W3, 0), interleave(W3, 1))
        il2 = (interleave(W2, 0), interleave(W2, 1))

        # zero-padded scratches for the transposed convs (borders must be 0)
        padt1_ref[...] = jnp.zeros(padt1_ref.shape, f32)
        padt2_ref[...] = jnp.zeros(padt2_ref.shape, f32)

        def conv3x3_row(src_ref, y, w_ref, w_out):
            """One output row of a 3x3 conv (no bias): (Cout, w_out) f32."""
            t0, t1, t2 = src_ref[y], src_ref[y + 1], src_ref[y + 2]
            taps = [t[:, dj:dj + w_out] for t in (t0, t1, t2) for dj in range(3)]
            rhs = jnp.concatenate(taps, axis=0).astype(bf16)        # (9*Cin, w_out)
            return jnp.dot(w_ref[...], rhs, preferred_element_type=f32)

        def reflect_rows(dst_ref, hp):
            top = dst_ref[2]
            dst_ref[0] = top
            bot = dst_ref[hp - 3]
            dst_ref[hp - 1] = bot

        # ---- conv1 (3x3 reflect) + 2x2 maxpool + ReLU  ->  pad2 ------------
        def l1_body(yo):
            c0 = conv3x3_row(x_ref, 2 * yo, w1_ref, W1)
            c1 = conv3x3_row(x_ref, 2 * yo + 1, w1_ref, W1)
            rmax = jnp.maximum(c0, c1).astype(bf16)                 # (C1, W1)
            pooled = jnp.maximum(
                jnp.dot(rmax, ev1, preferred_element_type=f32),
                jnp.dot(rmax, od1, preferred_element_type=f32))     # (C1, W2)
            pooled = jnp.maximum(pooled + b1_ref[...], 0.0)
            row = jnp.concatenate(
                [pooled[:, 1:2], pooled, pooled[:, W2 - 2:W2 - 1]], axis=1)
            pad2_ref[yo + 1] = row                                  # reflect cols baked in
        _loop(H2, l1_body)
        reflect_rows(pad2_ref, Hp2)

        # ---- conv2 (3x3 reflect) + 2x2 maxpool + ReLU  ->  pad3 ------------
        def l2_body(yo):
            c0 = conv3x3_row(pad2_ref, 2 * yo, w2_ref, W2)
            c1 = conv3x3_row(pad2_ref, 2 * yo + 1, w2_ref, W2)
            rmax = jnp.maximum(c0, c1).astype(bf16)                 # (C2, W2)
            pooled = jnp.maximum(
                jnp.dot(rmax, ev2, preferred_element_type=f32),
                jnp.dot(rmax, od2, preferred_element_type=f32))     # (C2, W3)
            pooled = jnp.maximum(pooled + b2_ref[...], 0.0)
            row = jnp.concatenate(
                [pooled[:, 1:2], pooled, pooled[:, W3 - 2:W3 - 1]], axis=1)
            pad3_ref[yo + 1] = row
        _loop(H3, l2_body)
        reflect_rows(pad3_ref, Hp3)

        # ---- conv3 (3x3 reflect) + ReLU  ->  padt1 (zero-padded) -----------
        zc3 = jnp.zeros((C3, 1), f32)

        def l3_body(y):
            c = conv3x3_row(pad3_ref, y, w3_ref, W3)
            c = jnp.maximum(c + b3_ref[...], 0.0)                   # (C3, W3)
            padt1_ref[y + 1] = jnp.concatenate([zc3, c, zc3], axis=1)
        _loop(H3, l3_body)

        # ---- phase-decomposed ConvTranspose2d (k=4, s=2, p=1) --------------
        def tconv_pair(src_ref, y, wt_ref, bt_ref, w_in, il):
            """Output rows 2y and 2y+1, bias + ReLU applied: 2x (Cout, 2*w_in)."""
            t0, t1, t2 = src_ref[y], src_ref[y + 1], src_ref[y + 2]
            wt = wt_ref[...]
            bt = bt_ref[...]
            row_taps = ((t1, t0), (t1, t2))   # [py]: tiles for kernel rows (1,3) / (2,0)
            col_offs = ((1, 0), (1, 2))       # [px]: col offsets for kernel cols (1,3) / (2,0)
            rows = []
            for py in range(2):
                ta, tb = row_taps[py]
                phase = []
                for px in range(2):
                    ca, cb = col_offs[px]
                    rhs = jnp.concatenate(
                        [ta[:, ca:ca + w_in], ta[:, cb:cb + w_in],
                         tb[:, ca:ca + w_in], tb[:, cb:cb + w_in]],
                        axis=0).astype(bf16)                        # (4*Cin, w_in)
                    phase.append(
                        jnp.dot(wt[py, px], rhs, preferred_element_type=f32))
                row = (jnp.dot(phase[0].astype(bf16), il[0], preferred_element_type=f32) +
                       jnp.dot(phase[1].astype(bf16), il[1], preferred_element_type=f32))
                rows.append(jnp.maximum(row + bt, 0.0))             # (Cout, 2*w_in)
            return rows[0], rows[1]

        # ---- tconv1 + ReLU  ->  padt2 (zero-padded) ------------------------
        zc4 = jnp.zeros((C4, 1), f32)

        def l4_body(y):
            r0, r1 = tconv_pair(padt1_ref, y, wt1_ref, bt1_ref, W3, il3)
            padt2_ref[2 * y + 1] = jnp.concatenate([zc4, r0, zc4], axis=1)
            padt2_ref[2 * y + 2] = jnp.concatenate([zc4, r1, zc4], axis=1)
        _loop(H3, l4_body)

        # ---- tconv2 + ReLU, fused 1x1 convFinal + ReLU  ->  out ------------
        def l5_body(y):
            r0, r1 = tconv_pair(padt2_ref, y, wt2_ref, bt2_ref, W2, il2)
            wf = wf_ref[...]
            bfv = bf_ref[...]
            out_ref[2 * y] = jnp.maximum(
                jnp.dot(wf, r0.astype(bf16), preferred_element_type=f32) + bfv, 0.0)
            out_ref[2 * y + 1] = jnp.maximum(
                jnp.dot(wf, r1.astype(bf16), preferred_element_type=f32) + bfv, 0.0)
        _loop(H2, l5_body)

    return kernel


# ----------------------------------------------------------------------------
# Parameter preprocessing (one-time, outside the kernel)
# ----------------------------------------------------------------------------
def _conv_mat(w):
    # (Cout, Cin, 3, 3) -> (Cout, 9*Cin), column index = (di*3+dj)*Cin + ci
    cout, cin, kh, kw = w.shape
    return w.transpose(0, 2, 3, 1).reshape(cout, kh * kw * cin).astype(jnp.bfloat16)


def _tconv_phase_mats(w):
    # (Cin, Cout, 4, 4) -> (2, 2, Cout, 4*Cin), phase-decomposed stride-2 taps
    ky = ((1, 3), (2, 0))
    kx = ((1, 3), (2, 0))
    mats = []
    for py in range(2):
        row = []
        for px in range(2):
            blocks = [w[:, :, ky[py][r], kx[px][c]].T
                      for r in range(2) for c in range(2)]          # (Cout, Cin)
            row.append(jnp.concatenate(blocks, axis=1))             # (Cout, 4*Cin)
        mats.append(jnp.stack(row))
    return jnp.stack(mats).astype(jnp.bfloat16)


def _col(b):
    return b.reshape(-1, 1).astype(jnp.float32)


# ----------------------------------------------------------------------------
# Forward pass
# ----------------------------------------------------------------------------
@jax.jit
def net_forward(x, p):
    B, cin, H, W = x.shape
    assert cin == C_IN and H % 4 == 0 and W % 4 == 0

    w1 = _conv_mat(p["conv1_w"]);  b1 = _col(p["conv1_b"])
    w2 = _conv_mat(p["conv2_w"]);  b2 = _col(p["conv2_b"])
    w3 = _conv_mat(p["conv3_w"]);  b3 = _col(p["conv3_b"])
    wt1 = _tconv_phase_mats(p["tconv1_w"]); bt1 = _col(p["tconv1_b"])
    wt2 = _tconv_phase_mats(p["tconv2_w"]); bt2 = _col(p["tconv2_b"])
    wf = p["convF_w"].reshape(C_OUT, C5).astype(jnp.bfloat16)
    bfin = _col(p["convF_b"])

    # reflect-pad the network input once and switch to (row, C, W) layout
    Hp, Wp = H + 2, W + 2
    xin = jnp.pad(x, ((0, 0), (0, 0), (1, 1), (1, 1)), mode="reflect")
    xin = xin.transpose(0, 2, 1, 3).reshape(B * Hp, C_IN, Wp).astype(jnp.float32)

    H2, W2, H3, W3 = H // 2, W // 2, H // 4, W // 4
    kernel = _make_kernel(H, W)

    img = lambda b: (b, 0, 0)
    c2 = lambda b: (0, 0)
    c4 = lambda b: (0, 0, 0, 0)

    in_specs = [
        pl.BlockSpec((Hp, C_IN, Wp), img),
        pl.BlockSpec(w1.shape, c2), pl.BlockSpec(b1.shape, c2),
        pl.BlockSpec(w2.shape, c2), pl.BlockSpec(b2.shape, c2),
        pl.BlockSpec(w3.shape, c2), pl.BlockSpec(b3.shape, c2),
        pl.BlockSpec(wt1.shape, c4), pl.BlockSpec(bt1.shape, c2),
        pl.BlockSpec(wt2.shape, c4), pl.BlockSpec(bt2.shape, c2),
        pl.BlockSpec(wf.shape, c2), pl.BlockSpec(bfin.shape, c2),
    ]

    out = pl.pallas_call(
        kernel,
        out_shape=jax.ShapeDtypeStruct((B * H, C_OUT, W), jnp.float32),
        grid=(B,),
        in_specs=in_specs,
        out_specs=pl.BlockSpec((H, C_OUT, W), img),
        scratch_shapes=[
            pltpu.VMEM((H2 + 2, C1, W2 + 2), jnp.float32),   # pad2   (reflect)
            pltpu.VMEM((H3 + 2, C2, W3 + 2), jnp.float32),   # pad3   (reflect)
            pltpu.VMEM((H3 + 2, C3, W3 + 2), jnp.float32),   # padt1  (zero)
            pltpu.VMEM((H2 + 2, C4, W2 + 2), jnp.float32),   # padt2  (zero)
        ],
        compiler_params=pltpu.CompilerParams(
            dimension_semantics=("parallel",)),
    )(xin, w1, b1, w2, b2, w3, b3, wt1, bt1, wt2, bt2, wf, bfin)

    return out.reshape(B, H, C_OUT, W).transpose(0, 2, 1, 3)


# ----------------------------------------------------------------------------
# Deterministic parameter init (PyTorch-like shapes)
# ----------------------------------------------------------------------------
def init_params(key):
    keys = jax.random.split(key, 12)

    def w_init(k, shape, fan_in):
        bound = 1.0 / jnp.sqrt(fan_in)
        return jax.random.uniform(k, shape, jnp.float32, -bound, bound)

    return {
        # Conv2d weights: (Cout, Cin, kh, kw)
        "conv1_w": w_init(keys[0], (8, 2, 3, 3), 2 * 9),
        "conv1_b": w_init(keys[1], (8,), 2 * 9),
        "conv2_w": w_init(keys[2], (16, 8, 3, 3), 8 * 9),
        "conv2_b": w_init(keys[3], (16,), 8 * 9),
        "conv3_w": w_init(keys[4], (32, 16, 3, 3), 16 * 9),
        "conv3_b": w_init(keys[5], (32,), 16 * 9),
        # ConvTranspose2d weights: (Cin, Cout, kh, kw)
        "tconv1_w": w_init(keys[6], (32, 16, 4, 4), 32 * 16),
        "tconv1_b": w_init(keys[7], (16,), 32 * 16),
        "tconv2_w": w_init(keys[8], (16, 8, 4, 4), 16 * 16),
        "tconv2_b": w_init(keys[9], (8,), 16 * 16),
        "convF_w": w_init(keys[10], (2, 8, 1, 1), 8),
        "convF_b": w_init(keys[11], (2,), 8),
    }


if __name__ == "__main__":
    key = jax.random.PRNGKey(0)
    pkey, xkey = jax.random.split(key)
    params = init_params(pkey)

    # NCHW input: batch=2, channels=2 (conv1 expects 2), spatial 16x16.
    x = jax.random.normal(xkey, (2, 2, 16, 16), dtype=jnp.float32)

    out = net_forward(x, params)
    out = jax.block_until_ready(out)

    assert out.shape == (2, 2, 16, 16), out.shape
    assert out.dtype == jnp.float32
    assert bool(jnp.all(jnp.isfinite(out)))
    print("KERNEL_OK")
</pallas_src>

<mosaic_0001>
module attributes {stable_mosaic.version = 11 : i64} {
  func.func @kernel(%arg0: i32, %arg1: memref<18x2x18xf32, #tpu.memory_space<vmem>>, %arg2: memref<8x18xbf16, #tpu.memory_space<vmem>>, %arg3: memref<8x1xf32, #tpu.memory_space<vmem>>, %arg4: memref<16x72xbf16, #tpu.memory_space<vmem>>, %arg5: memref<16x1xf32, #tpu.memory_space<vmem>>, %arg6: memref<32x144xbf16, #tpu.memory_space<vmem>>, %arg7: memref<32x1xf32, #tpu.memory_space<vmem>>, %arg8: memref<2x2x16x128xbf16, #tpu.memory_space<vmem>>, %arg9: memref<16x1xf32, #tpu.memory_space<vmem>>, %arg10: memref<2x2x8x64xbf16, #tpu.memory_space<vmem>>, %arg11: memref<8x1xf32, #tpu.memory_space<vmem>>, %arg12: memref<2x8xbf16, #tpu.memory_space<vmem>>, %arg13: memref<2x1xf32, #tpu.memory_space<vmem>>, %arg14: memref<16x2x16xf32, #tpu.memory_space<vmem>>, %arg15: memref<10x8x10xf32, #tpu.memory_space<vmem>>, %arg16: memref<6x16x6xf32, #tpu.memory_space<vmem>>, %arg17: memref<6x32x6xf32, #tpu.memory_space<vmem>>, %arg18: memref<10x16x10xf32, #tpu.memory_space<vmem>>) attributes {dimension_semantics = [#tpu.dimension_semantics<parallel>], iteration_bounds = array<i64: 2>, scalar_prefetch = 0 : i64, scratch_operands = 4 : i64, tpu.core_type = #tpu.core_type<tc>, window_params = [{transform_indices = @transform_0, window_bounds = array<i64: 18, 2, 18>}, {pipeline_mode = #tpu.pipeline_mode<synchronous>, transform_indices = @transform_1, window_bounds = array<i64: 8, 18>}, {pipeline_mode = #tpu.pipeline_mode<synchronous>, transform_indices = @transform_2, window_bounds = array<i64: 8, 1>}, {pipeline_mode = #tpu.pipeline_mode<synchronous>, transform_indices = @transform_3, window_bounds = array<i64: 16, 72>}, {pipeline_mode = #tpu.pipeline_mode<synchronous>, transform_indices = @transform_4, window_bounds = array<i64: 16, 1>}, {pipeline_mode = #tpu.pipeline_mode<synchronous>, transform_indices = @transform_5, window_bounds = array<i64: 32, 144>}, {pipeline_mode = #tpu.pipeline_mode<synchronous>, transform_indices = @transform_6, window_bounds = array<i64: 32, 1>}, {pipeline_mode = #tpu.pipeline_mode<synchronous>, transform_indices = @transform_7, window_bounds = array<i64: 2, 2, 16, 128>}, {pipeline_mode = #tpu.pipeline_mode<synchronous>, transform_indices = @transform_8, window_bounds = array<i64: 16, 1>}, {pipeline_mode = #tpu.pipeline_mode<synchronous>, transform_indices = @transform_9, window_bounds = array<i64: 2, 2, 8, 64>}, {pipeline_mode = #tpu.pipeline_mode<synchronous>, transform_indices = @transform_10, window_bounds = array<i64: 8, 1>}, {pipeline_mode = #tpu.pipeline_mode<synchronous>, transform_indices = @transform_11, window_bounds = array<i64: 2, 8>}, {pipeline_mode = #tpu.pipeline_mode<synchronous>, transform_indices = @transform_12, window_bounds = array<i64: 2, 1>}, {transform_indices = @transform_13, window_bounds = array<i64: 16, 2, 16>}]} {
    %0 = tpu.iota {dimensions = array<i32: 0>} : vector<16x8xi32>
    %1 = tpu.iota {dimensions = array<i32: 1>} : vector<16x8xi32>
    %c2_i32 = arith.constant 2 : i32
    %2 = vector.broadcast %c2_i32 : i32 to vector<16x8xi32>
    %3 = arith.muli %2, %1 : vector<16x8xi32>
    %c0_i32 = arith.constant 0 : i32
    %4 = vector.broadcast %c0_i32 : i32 to vector<16x8xi32>
    %5 = arith.addi %3, %4 : vector<16x8xi32>
    %6 = arith.cmpi eq, %0, %5 : vector<16x8xi32>
    %7 = arith.extui %6 : vector<16x8xi1> to vector<16x8xi32>
    %8 = arith.sitofp %7 : vector<16x8xi32> to vector<16x8xf32>
    %9 = arith.truncf %8 : vector<16x8xf32> to vector<16x8xbf16>
    %10 = tpu.iota {dimensions = array<i32: 0>} : vector<16x8xi32>
    %11 = tpu.iota {dimensions = array<i32: 1>} : vector<16x8xi32>
    %c2_i32_0 = arith.constant 2 : i32
    %12 = vector.broadcast %c2_i32_0 : i32 to vector<16x8xi32>
    %13 = arith.muli %12, %11 : vector<16x8xi32>
    %c1_i32 = arith.constant 1 : i32
    %14 = vector.broadcast %c1_i32 : i32 to vector<16x8xi32>
    %15 = arith.addi %13, %14 : vector<16x8xi32>
    %16 = arith.cmpi eq, %10, %15 : vector<16x8xi32>
    %17 = arith.extui %16 : vector<16x8xi1> to vector<16x8xi32>
    %18 = arith.sitofp %17 : vector<16x8xi32> to vector<16x8xf32>
    %19 = arith.truncf %18 : vector<16x8xf32> to vector<16x8xbf16>
    %20 = tpu.iota {dimensions = array<i32: 0>} : vector<8x4xi32>
    %21 = tpu.iota {dimensions = array<i32: 1>} : vector<8x4xi32>
    %c2_i32_1 = arith.constant 2 : i32
    %22 = vector.broadcast %c2_i32_1 : i32 to vector<8x4xi32>
    %23 = arith.muli %22, %21 : vector<8x4xi32>
    %c0_i32_2 = arith.constant 0 : i32
    %24 = vector.broadcast %c0_i32_2 : i32 to vector<8x4xi32>
    %25 = arith.addi %23, %24 : vector<8x4xi32>
    %26 = arith.cmpi eq, %20, %25 : vector<8x4xi32>
    %27 = arith.extui %26 : vector<8x4xi1> to vector<8x4xi32>
    %28 = arith.sitofp %27 : vector<8x4xi32> to vector<8x4xf32>
    %29 = arith.truncf %28 : vector<8x4xf32> to vector<8x4xbf16>
    %30 = tpu.iota {dimensions = array<i32: 0>} : vector<8x4xi32>
    %31 = tpu.iota {dimensions = array<i32: 1>} : vector<8x4xi32>
    %c2_i32_3 = arith.constant 2 : i32
    %32 = vector.broadcast %c2_i32_3 : i32 to vector<8x4xi32>
    %33 = arith.muli %32, %31 : vector<8x4xi32>
    %c1_i32_4 = arith.constant 1 : i32
    %34 = vector.broadcast %c1_i32_4 : i32 to vector<8x4xi32>
    %35 = arith.addi %33, %34 : vector<8x4xi32>
    %36 = arith.cmpi eq, %30, %35 : vector<8x4xi32>
    %37 = arith.extui %36 : vector<8x4xi1> to vector<8x4xi32>
    %38 = arith.sitofp %37 : vector<8x4xi32> to vector<8x4xf32>
    %39 = arith.truncf %38 : vector<8x4xf32> to vector<8x4xbf16>
    %40 = tpu.iota {dimensions = array<i32: 0>} : vector<4x8xi32>
    %41 = tpu.iota {dimensions = array<i32: 1>} : vector<4x8xi32>
    %c2_i32_5 = arith.constant 2 : i32
    %42 = vector.broadcast %c2_i32_5 : i32 to vector<4x8xi32>
    %43 = arith.muli %42, %40 : vector<4x8xi32>
    %c0_i32_6 = arith.constant 0 : i32
    %44 = vector.broadcast %c0_i32_6 : i32 to vector<4x8xi32>
    %45 = arith.addi %43, %44 : vector<4x8xi32>
    %46 = arith.cmpi eq, %41, %45 : vector<4x8xi32>
    %47 = arith.extui %46 : vector<4x8xi1> to vector<4x8xi32>
    %48 = arith.sitofp %47 : vector<4x8xi32> to vector<4x8xf32>
    %49 = arith.truncf %48 : vector<4x8xf32> to vector<4x8xbf16>
    %50 = tpu.iota {dimensions = array<i32: 0>} : vector<4x8xi32>
    %51 = tpu.iota {dimensions = array<i32: 1>} : vector<4x8xi32>
    %c2_i32_7 = arith.constant 2 : i32
    %52 = vector.broadcast %c2_i32_7 : i32 to vector<4x8xi32>
    %53 = arith.muli %52, %50 : vector<4x8xi32>
    %c1_i32_8 = arith.constant 1 : i32
    %54 = vector.broadcast %c1_i32_8 : i32 to vector<4x8xi32>
    %55 = arith.addi %53, %54 : vector<4x8xi32>
    %56 = arith.cmpi eq, %51, %55 : vector<4x8xi32>
    %57 = arith.extui %56 : vector<4x8xi1> to vector<4x8xi32>
    %58 = arith.sitofp %57 : vector<4x8xi32> to vector<4x8xf32>
    %59 = arith.truncf %58 : vector<4x8xf32> to vector<4x8xbf16>
    %60 = tpu.iota {dimensions = array<i32: 0>} : vector<8x16xi32>
    %61 = tpu.iota {dimensions = array<i32: 1>} : vector<8x16xi32>
    %c2_i32_9 = arith.constant 2 : i32
    %62 = vector.broadcast %c2_i32_9 : i32 to vector<8x16xi32>
    %63 = arith.muli %62, %60 : vector<8x16xi32>
    %c0_i32_10 = arith.constant 0 : i32
    %64 = vector.broadcast %c0_i32_10 : i32 to vector<8x16xi32>
    %65 = arith.addi %63, %64 : vector<8x16xi32>
    %66 = arith.cmpi eq, %61, %65 : vector<8x16xi32>
    %67 = arith.extui %66 : vector<8x16xi1> to vector<8x16xi32>
    %68 = arith.sitofp %67 : vector<8x16xi32> to vector<8x16xf32>
    %69 = arith.truncf %68 : vector<8x16xf32> to vector<8x16xbf16>
    %70 = tpu.iota {dimensions = array<i32: 0>} : vector<8x16xi32>
    %71 = tpu.iota {dimensions = array<i32: 1>} : vector<8x16xi32>
    %c2_i32_11 = arith.constant 2 : i32
    %72 = vector.broadcast %c2_i32_11 : i32 to vector<8x16xi32>
    %73 = arith.muli %72, %70 : vector<8x16xi32>
    %c1_i32_12 = arith.constant 1 : i32
    %74 = vector.broadcast %c1_i32_12 : i32 to vector<8x16xi32>
    %75 = arith.addi %73, %74 : vector<8x16xi32>
    %76 = arith.cmpi eq, %71, %75 : vector<8x16xi32>
    %77 = arith.extui %76 : vector<8x16xi1> to vector<8x16xi32>
    %78 = arith.sitofp %77 : vector<8x16xi32> to vector<8x16xf32>
    %79 = arith.truncf %78 : vector<8x16xf32> to vector<8x16xbf16>
    %cst = arith.constant 0.000000e+00 : f32
    %80 = vector.broadcast %cst : f32 to vector<6x32x6xf32>
    %c0 = arith.constant 0 : index
    %c0_13 = arith.constant 0 : index
    %c0_14 = arith.constant 0 : index
    %81 = vector.load %arg17[%c0, %c0_13, %c0_14] : memref<6x32x6xf32, #tpu.memory_space<vmem>>, vector<6x32x6xf32>
    tpu.vector_store %arg17[%c0, %c0_13, %c0_14], %80 {strides = array<i32>} : memref<6x32x6xf32, #tpu.memory_space<vmem>>, vector<6x32x6xf32>,
    %cst_15 = arith.constant 0.000000e+00 : f32
    %82 = vector.broadcast %cst_15 : f32 to vector<10x16x10xf32>
    %c0_16 = arith.constant 0 : index
    %c0_17 = arith.constant 0 : index
    %c0_18 = arith.constant 0 : index
    %83 = vector.load %arg18[%c0_16, %c0_17, %c0_18] : memref<10x16x10xf32, #tpu.memory_space<vmem>>, vector<10x16x10xf32>
    tpu.vector_store %arg18[%c0_16, %c0_17, %c0_18], %82 {strides = array<i32>} : memref<10x16x10xf32, #tpu.memory_space<vmem>>, vector<10x16x10xf32>,
    %c0_i32_19 = arith.constant 0 : i32
    %c8_i32 = arith.constant 8 : i32
    %84 = arith.addi %c0_i32_19, %c8_i32 : i32
    %c1_i32_20 = arith.constant 1 : i32
    scf.for %arg19 = %c0_i32_19 to %84 step %c1_i32_20  : i32 {
      %c2_i32_58 = arith.constant 2 : i32
      %111 = arith.muli %c2_i32_58, %arg19 : i32
      %112 = arith.index_cast %111 : i32 to index
      %c0_59 = arith.constant 0 : index
      %c0_60 = arith.constant 0 : index
      %113 = vector.load %arg1[%112, %c0_59, %c0_60] : memref<18x2x18xf32, #tpu.memory_space<vmem>>, vector<1x2x18xf32>
      %114 = vector.shape_cast %113 : vector<1x2x18xf32> to vector<2x18xf32>
      %c1_i32_61 = arith.constant 1 : i32
      %115 = arith.addi %111, %c1_i32_61 : i32
      %116 = arith.index_cast %115 : i32 to index
      %c0_62 = arith.constant 0 : index
      %c0_63 = arith.constant 0 : index
      %117 = vector.load %arg1[%116, %c0_62, %c0_63] : memref<18x2x18xf32, #tpu.memory_space<vmem>>, vector<1x2x18xf32>
      %118 = vector.shape_cast %117 : vector<1x2x18xf32> to vector<2x18xf32>
      %c2_i32_64 = arith.constant 2 : i32
      %119 = arith.addi %111, %c2_i32_64 : i32
      %120 = arith.index_cast %119 : i32 to index
      %c0_65 = arith.constant 0 : index
      %c0_66 = arith.constant 0 : index
      %121 = vector.load %arg1[%120, %c0_65, %c0_66] : memref<18x2x18xf32, #tpu.memory_space<vmem>>, vector<1x2x18xf32>
      %122 = vector.shape_cast %121 : vector<1x2x18xf32> to vector<2x18xf32>
      %123 = vector.extract_strided_slice %114 {offsets = [0, 0], sizes = [2, 16], strides = [1, 1]} : vector<2x18xf32> to vector<2x16xf32>
      %124 = vector.extract_strided_slice %114 {offsets = [0, 1], sizes = [2, 16], strides = [1, 1]} : vector<2x18xf32> to vector<2x16xf32>
      %125 = vector.extract_strided_slice %114 {offsets = [0, 2], sizes = [2, 16], strides = [1, 1]} : vector<2x18xf32> to vector<2x16xf32>
      %126 = vector.extract_strided_slice %118 {offsets = [0, 0], sizes = [2, 16], strides = [1, 1]} : vector<2x18xf32> to vector<2x16xf32>
      %127 = vector.extract_strided_slice %118 {offsets = [0, 1], sizes = [2, 16], strides = [1, 1]} : vector<2x18xf32> to vector<2x16xf32>
      %128 = vector.extract_strided_slice %118 {offsets = [0, 2], sizes = [2, 16], strides = [1, 1]} : vector<2x18xf32> to vector<2x16xf32>
      %129 = vector.extract_strided_slice %122 {offsets = [0, 0], sizes = [2, 16], strides = [1, 1]} : vector<2x18xf32> to vector<2x16xf32>
      %130 = vector.extract_strided_slice %122 {offsets = [0, 1], sizes = [2, 16], strides = [1, 1]} : vector<2x18xf32> to vector<2x16xf32>
      %131 = vector.extract_strided_slice %122 {offsets = [0, 2], sizes = [2, 16], strides = [1, 1]} : vector<2x18xf32> to vector<2x16xf32>
      %132 = tpu.concatenate %123, %124, %125, %126, %127, %128, %129, %130, %131 in 0 : vector<2x16xf32>, vector<2x16xf32>, vector<2x16xf32>, vector<2x16xf32>, vector<2x16xf32>, vector<2x16xf32>, vector<2x16xf32>, vector<2x16xf32>, vector<2x16xf32> -> vector<18x16xf32>
      %133 = arith.truncf %132 : vector<18x16xf32> to vector<18x16xbf16>
      %c0_67 = arith.constant 0 : index
      %c0_68 = arith.constant 0 : index
      %134 = vector.load %arg2[%c0_67, %c0_68] : memref<8x18xbf16, #tpu.memory_space<vmem>>, vector<8x18xbf16>
      %cst_69 = arith.constant dense<0.000000e+00> : vector<8x16xf32>
      %135 = tpu.matmul %134, %133, %cst_69 {dimension_numbers = #tpu.dot_dimension_numbers<[1], [0], [0], [1], [0, 0, 1, 1], [], []>} : vector<8x18xbf16>, vector<18x16xbf16>, vector<8x16xf32> -> vector<8x16xf32>
      %c2_i32_70 = arith.constant 2 : i32
      %136 = arith.muli %c2_i32_70, %arg19 : i32
      %c1_i32_71 = arith.constant 1 : i32
      %137 = arith.addi %136, %c1_i32_71 : i32
      %138 = arith.index_cast %137 : i32 to index
      %c0_72 = arith.constant 0 : index
      %c0_73 = arith.constant 0 : index
      %139 = vector.load %arg1[%138, %c0_72, %c0_73] : memref<18x2x18xf32, #tpu.memory_space<vmem>>, vector<1x2x18xf32>
      %140 = vector.shape_cast %139 : vector<1x2x18xf32> to vector<2x18xf32>
      %c1_i32_74 = arith.constant 1 : i32
      %141 = arith.addi %137, %c1_i32_74 : i32
      %142 = arith.index_cast %141 : i32 to index
      %c0_75 = arith.constant 0 : index
      %c0_76 = arith.constant 0 : index
      %143 = vector.load %arg1[%142, %c0_75, %c0_76] : memref<18x2x18xf32, #tpu.memory_space<vmem>>, vector<1x2x18xf32>
      %144 = vector.shape_cast %143 : vector<1x2x18xf32> to vector<2x18xf32>
      %c2_i32_77 = arith.constant 2 : i32
      %145 = arith.addi %137, %c2_i32_77 : i32
      %146 = arith.index_cast %145 : i32 to index
      %c0_78 = arith.constant 0 : index
      %c0_79 = arith.constant 0 : index
      %147 = vector.load %arg1[%146, %c0_78, %c0_79] : memref<18x2x18xf32, #tpu.memory_space<vmem>>, vector<1x2x18xf32>
      %148 = vector.shape_cast %147 : vector<1x2x18xf32> to vector<2x18xf32>
      %149 = vector.extract_strided_slice %140 {offsets = [0, 0], sizes = [2, 16], strides = [1, 1]} : vector<2x18xf32> to vector<2x16xf32>
      %150 = vector.extract_strided_slice %140 {offsets = [0, 1], sizes = [2, 16], strides = [1, 1]} : vector<2x18xf32> to vector<2x16xf32>
      %151 = vector.extract_strided_slice %140 {offsets = [0, 2], sizes = [2, 16], strides = [1, 1]} : vector<2x18xf32> to vector<2x16xf32>
      %152 = vector.extract_strided_slice %144 {offsets = [0, 0], sizes = [2, 16], strides = [1, 1]} : vector<2x18xf32> to vector<2x16xf32>
      %153 = vector.extract_strided_slice %144 {offsets = [0, 1], sizes = [2, 16], strides = [1, 1]} : vector<2x18xf32> to vector<2x16xf32>
      %154 = vector.extract_strided_slice %144 {offsets = [0, 2], sizes = [2, 16], strides = [1, 1]} : vector<2x18xf32> to vector<2x16xf32>
      %155 = vector.extract_strided_slice %148 {offsets = [0, 0], sizes = [2, 16], strides = [1, 1]} : vector<2x18xf32> to vector<2x16xf32>
      %156 = vector.extract_strided_slice %148 {offsets = [0, 1], sizes = [2, 16], strides = [1, 1]} : vector<2x18xf32> to vector<2x16xf32>
      %157 = vector.extract_strided_slice %148 {offsets = [0, 2], sizes = [2, 16], strides = [1, 1]} : vector<2x18xf32> to vector<2x16xf32>
      %158 = tpu.concatenate %149, %150, %151, %152, %153, %154, %155, %156, %157 in 0 : vector<2x16xf32>, vector<2x16xf32>, vector<2x16xf32>, vector<2x16xf32>, vector<2x16xf32>, vector<2x16xf32>, vector<2x16xf32>, vector<2x16xf32>, vector<2x16xf32> -> vector<18x16xf32>
      %159 = arith.truncf %158 : vector<18x16xf32> to vector<18x16xbf16>
      %c0_80 = arith.constant 0 : index
      %c0_81 = arith.constant 0 : index
      %160 = vector.load %arg2[%c0_80, %c0_81] : memref<8x18xbf16, #tpu.memory_space<vmem>>, vector<8x18xbf16>
      %cst_82 = arith.constant dense<0.000000e+00> : vector<8x16xf32>
      %161 = tpu.matmul %160, %159, %cst_82 {dimension_numbers = #tpu.dot_dimension_numbers<[1], [0], [0], [1], [0, 0, 1, 1], [], []>} : vector<8x18xbf16>, vector<18x16xbf16>, vector<8x16xf32> -> vector<8x16xf32>
      %162 = arith.maximumf %135, %161 : vector<8x16xf32>
      %163 = arith.truncf %162 : vector<8x16xf32> to vector<8x16xbf16>
      %cst_83 = arith.constant dense<0.000000e+00> : vector<8x8xf32>
      %164 = tpu.matmul %163, %9, %cst_83 {dimension_numbers = #tpu.dot_dimension_numbers<[1], [0], [0], [1], [0, 0, 1, 1], [], []>} : vector<8x16xbf16>, vector<16x8xbf16>, vector<8x8xf32> -> vector<8x8xf32>
      %cst_84 = arith.constant dense<0.000000e+00> : vector<8x8xf32>
      %165 = tpu.matmul %163, %19, %cst_84 {dimension_numbers = #tpu.dot_dimension_numbers<[1], [0], [0], [1], [0, 0, 1, 1], [], []>} : vector<8x16xbf16>, vector<16x8xbf16>, vector<8x8xf32> -> vector<8x8xf32>
      %166 = arith.maximumf %164, %165 : vector<8x8xf32>
      %c0_85 = arith.constant 0 : index
      %c0_86 = arith.constant 0 : index
      %167 = vector.load %arg3[%c0_85, %c0_86] : memref<8x1xf32, #tpu.memory_space<vmem>>, vector<8x1xf32>
      %168 = vector.broadcast %167 : vector<8x1xf32> to vector<8x8xf32>
      %169 = arith.addf %166, %168 : vector<8x8xf32>
      %cst_87 = arith.constant 0.000000e+00 : f32
      %170 = vector.broadcast %cst_87 : f32 to vector<8x8xf32>
      %171 = arith.maximumf %169, %170 : vector<8x8xf32>
      %172 = vector.extract_strided_slice %171 {offsets = [0, 1], sizes = [8, 1], strides = [1, 1]} : vector<8x8xf32> to vector<8x1xf32>
      %173 = vector.extract_strided_slice %171 {offsets = [0, 6], sizes = [8, 1], strides = [1, 1]} : vector<8x8xf32> to vector<8x1xf32>
      %174 = tpu.concatenate %172, %171, %173 in 1 : vector<8x1xf32>, vector<8x8xf32>, vector<8x1xf32> -> vector<8x10xf32>
      %c1_i32_88 = arith.constant 1 : i32
      %175 = arith.addi %arg19, %c1_i32_88 : i32
      %176 = arith.index_cast %175 : i32 to index
      %c0_89 = arith.constant 0 : index
      %c0_90 = arith.constant 0 : index
      %177 = vector.load %arg15[%176, %c0_89, %c0_90] : memref<10x8x10xf32, #tpu.memory_space<vmem>>, vector<1x8x10xf32>
      %178 = vector.shape_cast %177 : vector<1x8x10xf32> to vector<8x10xf32>
      %179 = vector.shape_cast %174 : vector<8x10xf32> to vector<1x8x10xf32>
      tpu.vector_store %arg15[%176, %c0_89, %c0_90], %179 {strides = array<i32>} : memref<10x8x10xf32, #tpu.memory_space<vmem>>, vector<1x8x10xf32>,
    }
    %c8_i32_21 = arith.constant 8 : i32
    %c2 = arith.constant 2 : index
    %c0_22 = arith.constant 0 : index
    %c0_23 = arith.constant 0 : index
    %85 = vector.load %arg15[%c2, %c0_22, %c0_23] : memref<10x8x10xf32, #tpu.memory_space<vmem>>, vector<1x8x10xf32>
    %86 = vector.shape_cast %85 : vector<1x8x10xf32> to vector<8x10xf32>
    %c0_24 = arith.constant 0 : index
    %c0_25 = arith.constant 0 : index
    %c0_26 = arith.constant 0 : index
    %87 = vector.load %arg15[%c0_24, %c0_25, %c0_26] : memref<10x8x10xf32, #tpu.memory_space<vmem>>, vector<1x8x10xf32>
    %88 = vector.shape_cast %87 : vector<1x8x10xf32> to vector<8x10xf32>
    %89 = vector.shape_cast %86 : vector<8x10xf32> to vector<1x8x10xf32>
    tpu.vector_store %arg15[%c0_24, %c0_25, %c0_26], %89 {strides = array<i32>} : memref<10x8x10xf32, #tpu.memory_space<vmem>>, vector<1x8x10xf32>,
    %c7 = arith.constant 7 : index
    %c0_27 = arith.constant 0 : index
    %c0_28 = arith.constant 0 : index
    %90 = vector.load %arg15[%c7, %c0_27, %c0_28] : memref<10x8x10xf32, #tpu.memory_space<vmem>>, vector<1x8x10xf32>
    %91 = vector.shape_cast %90 : vector<1x8x10xf32> to vector<8x10xf32>
    %c9 = arith.constant 9 : index
    %c0_29 = arith.constant 0 : index
    %c0_30 = arith.constant 0 : index
    %92 = vector.load %arg15[%c9, %c0_29, %c0_30] : memref<10x8x10xf32, #tpu.memory_space<vmem>>, vector<1x8x10xf32>
    %93 = vector.shape_cast %92 : vector<1x8x10xf32> to vector<8x10xf32>
    %94 = vector.shape_cast %91 : vector<8x10xf32> to vector<1x8x10xf32>
    tpu.vector_store %arg15[%c9, %c0_29, %c0_30], %94 {strides = array<i32>} : memref<10x8x10xf32, #tpu.memory_space<vmem>>, vector<1x8x10xf32>,
    %c0_i32_31 = arith.constant 0 : i32
    %c4_i32 = arith.constant 4 : i32
    %95 = arith.addi %c0_i32_31, %c4_i32 : i32
    %c1_i32_32 = arith.constant 1 : i32
    scf.for %arg19 = %c0_i32_31 to %95 step %c1_i32_32  : i32 {
      %c2_i32_58 = arith.constant 2 : i32
      %111 = arith.muli %c2_i32_58, %arg19 : i32
      %112 = arith.index_cast %111 : i32 to index
      %c0_59 = arith.constant 0 : index
      %c0_60 = arith.constant 0 : index
      %113 = vector.load %arg15[%112, %c0_59, %c0_60] : memref<10x8x10xf32, #tpu.memory_space<vmem>>, vector<1x8x10xf32>
      %114 = vector.shape_cast %113 : vector<1x8x10xf32> to vector<8x10xf32>
      %c1_i32_61 = arith.constant 1 : i32
      %115 = arith.addi %111, %c1_i32_61 : i32
      %116 = arith.index_cast %115 : i32 to index
      %c0_62 = arith.constant 0 : index
      %c0_63 = arith.constant 0 : index
      %117 = vector.load %arg15[%116, %c0_62, %c0_63] : memref<10x8x10xf32, #tpu.memory_space<vmem>>, vector<1x8x10xf32>
      %118 = vector.shape_cast %117 : vector<1x8x10xf32> to vector<8x10xf32>
      %c2_i32_64 = arith.constant 2 : i32
      %119 = arith.addi %111, %c2_i32_64 : i32
      %120 = arith.index_cast %119 : i32 to index
      %c0_65 = arith.constant 0 : index
      %c0_66 = arith.constant 0 : index
      %121 = vector.load %arg15[%120, %c0_65, %c0_66] : memref<10x8x10xf32, #tpu.memory_space<vmem>>, vector<1x8x10xf32>
      %122 = vector.shape_cast %121 : vector<1x8x10xf32> to vector<8x10xf32>
      %123 = vector.extract_strided_slice %114 {offsets = [0, 0], sizes = [8, 8], strides = [1, 1]} : vector<8x10xf32> to vector<8x8xf32>
      %124 = vector.extract_strided_slice %114 {offsets = [0, 1], sizes = [8, 8], strides = [1, 1]} : vector<8x10xf32> to vector<8x8xf32>
      %125 = vector.extract_strided_slice %114 {offsets = [0, 2], sizes = [8, 8], strides = [1, 1]} : vector<8x10xf32> to vector<8x8xf32>
      %126 = vector.extract_strided_slice %118 {offsets = [0, 0], sizes = [8, 8], strides = [1, 1]} : vector<8x10xf32> to vector<8x8xf32>
      %127 = vector.extract_strided_slice %118 {offsets = [0, 1], sizes = [8, 8], strides = [1, 1]} : vector<8x10xf32> to vector<8x8xf32>
      %128 = vector.extract_strided_slice %118 {offsets = [0, 2], sizes = [8, 8], strides = [1, 1]} : vector<8x10xf32> to vector<8x8xf32>
      %129 = vector.extract_strided_slice %122 {offsets = [0, 0], sizes = [8, 8], strides = [1, 1]} : vector<8x10xf32> to vector<8x8xf32>
      %130 = vector.extract_strided_slice %122 {offsets = [0, 1], sizes = [8, 8], strides = [1, 1]} : vector<8x10xf32> to vector<8x8xf32>
      %131 = vector.extract_strided_slice %122 {offsets = [0, 2], sizes = [8, 8], strides = [1, 1]} : vector<8x10xf32> to vector<8x8xf32>
      %132 = tpu.concatenate %123, %124, %125, %126, %127, %128, %129, %130, %131 in 0 : vector<8x8xf32>, vector<8x8xf32>, vector<8x8xf32>, vector<8x8xf32>, vector<8x8xf32>, vector<8x8xf32>, vector<8x8xf32>, vector<8x8xf32>, vector<8x8xf32> -> vector<72x8xf32>
      %133 = arith.truncf %132 : vector<72x8xf32> to vector<72x8xbf16>
      %c0_67 = arith.constant 0 : index
      %c0_68 = arith.constant 0 : index
      %134 = vector.load %arg4[%c0_67, %c0_68] : memref<16x72xbf16, #tpu.memory_space<vmem>>, vector<16x72xbf16>
      %cst_69 = arith.constant dense<0.000000e+00> : vector<16x8xf32>
      %135 = tpu.matmul %134, %133, %cst_69 {dimension_numbers = #tpu.dot_dimension_numbers<[1], [0], [0], [1], [0, 0, 1, 1], [], []>} : vector<16x72xbf16>, vector<72x8xbf16>, vector<16x8xf32> -> vector<16x8xf32>
      %c2_i32_70 = arith.constant 2 : i32
      %136 = arith.muli %c2_i32_70, %arg19 : i32
      %c1_i32_71 = arith.constant 1 : i32
      %137 = arith.addi %136, %c1_i32_71 : i32
      %138 = arith.index_cast %137 : i32 to index
      %c0_72 = arith.constant 0 : index
      %c0_73 = arith.constant 0 : index
      %139 = vector.load %arg15[%138, %c0_72, %c0_73] : memref<10x8x10xf32, #tpu.memory_space<vmem>>, vector<1x8x10xf32>
      %140 = vector.shape_cast %139 : vector<1x8x10xf32> to vector<8x10xf32>
      %c1_i32_74 = arith.constant 1 : i32
      %141 = arith.addi %137, %c1_i32_74 : i32
      %142 = arith.index_cast %141 : i32 to index
      %c0_75 = arith.constant 0 : index
      %c0_76 = arith.constant 0 : index
      %143 = vector.load %arg15[%142, %c0_75, %c0_76] : memref<10x8x10xf32, #tpu.memory_space<vmem>>, vector<1x8x10xf32>
      %144 = vector.shape_cast %143 : vector<1x8x10xf32> to vector<8x10xf32>
      %c2_i32_77 = arith.constant 2 : i32
      %145 = arith.addi %137, %c2_i32_77 : i32
      %146 = arith.index_cast %145 : i32 to index
      %c0_78 = arith.constant 0 : index
      %c0_79 = arith.constant 0 : index
      %147 = vector.load %arg15[%146, %c0_78, %c0_79] : memref<10x8x10xf32, #tpu.memory_space<vmem>>, vector<1x8x10xf32>
      %148 = vector.shape_cast %147 : vector<1x8x10xf32> to vector<8x10xf32>
      %149 = vector.extract_strided_slice %140 {offsets = [0, 0], sizes = [8, 8], strides = [1, 1]} : vector<8x10xf32> to vector<8x8xf32>
      %150 = vector.extract_strided_slice %140 {offsets = [0, 1], sizes = [8, 8], strides = [1, 1]} : vector<8x10xf32> to vector<8x8xf32>
      %151 = vector.extract_strided_slice %140 {offsets = [0, 2], sizes = [8, 8], strides = [1, 1]} : vector<8x10xf32> to vector<8x8xf32>
      %152 = vector.extract_strided_slice %144 {offsets = [0, 0], sizes = [8, 8], strides = [1, 1]} : vector<8x10xf32> to vector<8x8xf32>
      %153 = vector.extract_strided_slice %144 {offsets = [0, 1], sizes = [8, 8], strides = [1, 1]} : vector<8x10xf32> to vector<8x8xf32>
      %154 = vector.extract_strided_slice %144 {offsets = [0, 2], sizes = [8, 8], strides = [1, 1]} : vector<8x10xf32> to vector<8x8xf32>
      %155 = vector.extract_strided_slice %148 {offsets = [0, 0], sizes = [8, 8], strides = [1, 1]} : vector<8x10xf32> to vector<8x8xf32>
      %156 = vector.extract_strided_slice %148 {offsets = [0, 1], sizes = [8, 8], strides = [1, 1]} : vector<8x10xf32> to vector<8x8xf32>
      %157 = vector.extract_strided_slice %148 {offsets = [0, 2], sizes = [8, 8], strides = [1, 1]} : vector<8x10xf32> to vector<8x8xf32>
      %158 = tpu.concatenate %149, %150, %151, %152, %153, %154, %155, %156, %157 in 0 : vector<8x8xf32>, vector<8x8xf32>, vector<8x8xf32>, vector<8x8xf32>, vector<8x8xf32>, vector<8x8xf32>, vector<8x8xf32>, vector<8x8xf32>, vector<8x8xf32> -> vector<72x8xf32>
      %159 = arith.truncf %158 : vector<72x8xf32> to vector<72x8xbf16>
      %c0_80 = arith.constant 0 : index
      %c0_81 = arith.constant 0 : index
      %160 = vector.load %arg4[%c0_80, %c0_81] : memref<16x72xbf16, #tpu.memory_space<vmem>>, vector<16x72xbf16>
      %cst_82 = arith.constant dense<0.000000e+00> : vector<16x8xf32>
      %161 = tpu.matmul %160, %159, %cst_82 {dimension_numbers = #tpu.dot_dimension_numbers<[1], [0], [0], [1], [0, 0, 1, 1], [], []>} : vector<16x72xbf16>, vector<72x8xbf16>, vector<16x8xf32> -> vector<16x8xf32>
      %162 = arith.maximumf %135, %161 : vector<16x8xf32>
      %163 = arith.truncf %162 : vector<16x8xf32> to vector<16x8xbf16>
      %cst_83 = arith.constant dense<0.000000e+00> : vector<16x4xf32>
      %164 = tpu.matmul %163, %29, %cst_83 {dimension_numbers = #tpu.dot_dimension_numbers<[1], [0], [0], [1], [0, 0, 1, 1], [], []>} : vector<16x8xbf16>, vector<8x4xbf16>, vector<16x4xf32> -> vector<16x4xf32>
      %cst_84 = arith.constant dense<0.000000e+00> : vector<16x4xf32>
      %165 = tpu.matmul %163, %39, %cst_84 {dimension_numbers = #tpu.dot_dimension_numbers<[1], [0], [0], [1], [0, 0, 1, 1], [], []>} : vector<16x8xbf16>, vector<8x4xbf16>, vector<16x4xf32> -> vector<16x4xf32>
      %166 = arith.maximumf %164, %165 : vector<16x4xf32>
      %c0_85 = arith.constant 0 : index
      %c0_86 = arith.constant 0 : index
      %167 = vector.load %arg5[%c0_85, %c0_86] : memref<16x1xf32, #tpu.memory_space<vmem>>, vector<16x1xf32>
      %168 = vector.broadcast %167 : vector<16x1xf32> to vector<16x4xf32>
      %169 = arith.addf %166, %168 : vector<16x4xf32>
      %cst_87 = arith.constant 0.000000e+00 : f32
      %170 = vector.broadcast %cst_87 : f32 to vector<16x4xf32>
      %171 = arith.maximumf %169, %170 : vector<16x4xf32>
      %172 = vector.extract_strided_slice %171 {offsets = [0, 1], sizes = [16, 1], strides = [1, 1]} : vector<16x4xf32> to vector<16x1xf32>
      %173 = vector.extract_strided_slice %171 {offsets = [0, 2], sizes = [16, 1], strides = [1, 1]} : vector<16x4xf32> to vector<16x1xf32>
      %174 = tpu.concatenate %172, %171, %173 in 1 : vector<16x1xf32>, vector<16x4xf32>, vector<16x1xf32> -> vector<16x6xf32>
      %c1_i32_88 = arith.constant 1 : i32
      %175 = arith.addi %arg19, %c1_i32_88 : i32
      %176 = arith.index_cast %175 : i32 to index
      %c0_89 = arith.constant 0 : index
      %c0_90 = arith.constant 0 : index
      %177 = vector.load %arg16[%176, %c0_89, %c0_90] : memref<6x16x6xf32, #tpu.memory_space<vmem>>, vector<1x16x6xf32>
      %178 = vector.shape_cast %177 : vector<1x16x6xf32> to vector<16x6xf32>
      %179 = vector.shape_cast %174 : vector<16x6xf32> to vector<1x16x6xf32>
      tpu.vector_store %arg16[%176, %c0_89, %c0_90], %179 {strides = array<i32>} : memref<6x16x6xf32, #tpu.memory_space<vmem>>, vector<1x16x6xf32>,
    }
    %c4_i32_33 = arith.constant 4 : i32
    %c2_34 = arith.constant 2 : index
    %c0_35 = arith.constant 0 : index
    %c0_36 = arith.constant 0 : index
    %96 = vector.load %arg16[%c2_34, %c0_35, %c0_36] : memref<6x16x6xf32, #tpu.memory_space<vmem>>, vector<1x16x6xf32>
    %97 = vector.shape_cast %96 : vector<1x16x6xf32> to vector<16x6xf32>
    %c0_37 = arith.constant 0 : index
    %c0_38 = arith.constant 0 : index
    %c0_39 = arith.constant 0 : index
    %98 = vector.load %arg16[%c0_37, %c0_38, %c0_39] : memref<6x16x6xf32, #tpu.memory_space<vmem>>, vector<1x16x6xf32>
    %99 = vector.shape_cast %98 : vector<1x16x6xf32> to vector<16x6xf32>
    %100 = vector.shape_cast %97 : vector<16x6xf32> to vector<1x16x6xf32>
    tpu.vector_store %arg16[%c0_37, %c0_38, %c0_39], %100 {strides = array<i32>} : memref<6x16x6xf32, #tpu.memory_space<vmem>>, vector<1x16x6xf32>,
    %c3 = arith.constant 3 : index
    %c0_40 = arith.constant 0 : index
    %c0_41 = arith.constant 0 : index
    %101 = vector.load %arg16[%c3, %c0_40, %c0_41] : memref<6x16x6xf32, #tpu.memory_space<vmem>>, vector<1x16x6xf32>
    %102 = vector.shape_cast %101 : vector<1x16x6xf32> to vector<16x6xf32>
    %c5 = arith.constant 5 : index
    %c0_42 = arith.constant 0 : index
    %c0_43 = arith.constant 0 : index
    %103 = vector.load %arg16[%c5, %c0_42, %c0_43] : memref<6x16x6xf32, #tpu.memory_space<vmem>>, vector<1x16x6xf32>
    %104 = vector.shape_cast %103 : vector<1x16x6xf32> to vector<16x6xf32>
    %105 = vector.shape_cast %102 : vector<16x6xf32> to vector<1x16x6xf32>
    tpu.vector_store %arg16[%c5, %c0_42, %c0_43], %105 {strides = array<i32>} : memref<6x16x6xf32, #tpu.memory_space<vmem>>, vector<1x16x6xf32>,
    %cst_44 = arith.constant 0.000000e+00 : f32
    %106 = vector.broadcast %cst_44 : f32 to vector<32x1xf32>
    %c0_i32_45 = arith.constant 0 : i32
    %c4_i32_46 = arith.constant 4 : i32
    %107 = arith.addi %c0_i32_45, %c4_i32_46 : i32
    %c1_i32_47 = arith.constant 1 : i32
    scf.for %arg19 = %c0_i32_45 to %107 step %c1_i32_47  : i32 {
      %111 = arith.index_cast %arg19 : i32 to index
      %c0_58 = arith.constant 0 : index
      %c0_59 = arith.constant 0 : index
      %112 = vector.load %arg16[%111, %c0_58, %c0_59] : memref<6x16x6xf32, #tpu.memory_space<vmem>>, vector<1x16x6xf32>
      %113 = vector.shape_cast %112 : vector<1x16x6xf32> to vector<16x6xf32>
      %c1_i32_60 = arith.constant 1 : i32
      %114 = arith.addi %arg19, %c1_i32_60 : i32
      %115 = arith.index_cast %114 : i32 to index
      %c0_61 = arith.constant 0 : index
      %c0_62 = arith.constant 0 : index
      %116 = vector.load %arg16[%115, %c0_61, %c0_62] : memref<6x16x6xf32, #tpu.memory_space<vmem>>, vector<1x16x6xf32>
      %117 = vector.shape_cast %116 : vector<1x16x6xf32> to vector<16x6xf32>
      %c2_i32_63 = arith.constant 2 : i32
      %118 = arith.addi %arg19, %c2_i32_63 : i32
      %119 = arith.index_cast %118 : i32 to index
      %c0_64 = arith.constant 0 : index
      %c0_65 = arith.constant 0 : index
      %120 = vector.load %arg16[%119, %c0_64, %c0_65] : memref<6x16x6xf32, #tpu.memory_space<vmem>>, vector<1x16x6xf32>
      %121 = vector.shape_cast %120 : vector<1x16x6xf32> to vector<16x6xf32>
      %122 = vector.extract_strided_slice %113 {offsets = [0, 0], sizes = [16, 4], strides = [1, 1]} : vector<16x6xf32> to vector<16x4xf32>
      %123 = vector.extract_strided_slice %113 {offsets = [0, 1], sizes = [16, 4], strides = [1, 1]} : vector<16x6xf32> to vector<16x4xf32>
      %124 = vector.extract_strided_slice %113 {offsets = [0, 2], sizes = [16, 4], strides = [1, 1]} : vector<16x6xf32> to vector<16x4xf32>
      %125 = vector.extract_strided_slice %117 {offsets = [0, 0], sizes = [16, 4], strides = [1, 1]} : vector<16x6xf32> to vector<16x4xf32>
      %126 = vector.extract_strided_slice %117 {offsets = [0, 1], sizes = [16, 4], strides = [1, 1]} : vector<16x6xf32> to vector<16x4xf32>
      %127 = vector.extract_strided_slice %117 {offsets = [0, 2], sizes = [16, 4], strides = [1, 1]} : vector<16x6xf32> to vector<16x4xf32>
      %128 = vector.extract_strided_slice %121 {offsets = [0, 0], sizes = [16, 4], strides = [1, 1]} : vector<16x6xf32> to vector<16x4xf32>
      %129 = vector.extract_strided_slice %121 {offsets = [0, 1], sizes = [16, 4], strides = [1, 1]} : vector<16x6xf32> to vector<16x4xf32>
      %130 = vector.extract_strided_slice %121 {offsets = [0, 2], sizes = [16, 4], strides = [1, 1]} : vector<16x6xf32> to vector<16x4xf32>
      %131 = tpu.concatenate %122, %123, %124, %125, %126, %127, %128, %129, %130 in 0 : vector<16x4xf32>, vector<16x4xf32>, vector<16x4xf32>, vector<16x4xf32>, vector<16x4xf32>, vector<16x4xf32>, vector<16x4xf32>, vector<16x4xf32>, vector<16x4xf32> -> vector<144x4xf32>
      %132 = arith.truncf %131 : vector<144x4xf32> to vector<144x4xbf16>
      %c0_66 = arith.constant 0 : index
      %c0_67 = arith.constant 0 : index
      %133 = vector.load %arg6[%c0_66, %c0_67] : memref<32x144xbf16, #tpu.memory_space<vmem>>, vector<32x144xbf16>
      %cst_68 = arith.constant dense<0.000000e+00> : vector<32x4xf32>
      %134 = tpu.matmul %133, %132, %cst_68 {dimension_numbers = #tpu.dot_dimension_numbers<[1], [0], [0], [1], [0, 0, 1, 1], [], []>} : vector<32x144xbf16>, vector<144x4xbf16>, vector<32x4xf32> -> vector<32x4xf32>
      %c0_69 = arith.constant 0 : index
      %c0_70 = arith.constant 0 : index
      %135 = vector.load %arg7[%c0_69, %c0_70] : memref<32x1xf32, #tpu.memory_space<vmem>>, vector<32x1xf32>
      %136 = vector.broadcast %135 : vector<32x1xf32> to vector<32x4xf32>
      %137 = arith.addf %134, %136 : vector<32x4xf32>
      %cst_71 = arith.constant 0.000000e+00 : f32
      %138 = vector.broadcast %cst_71 : f32 to vector<32x4xf32>
      %139 = arith.maximumf %137, %138 : vector<32x4xf32>
      %140 = tpu.concatenate %106, %139, %106 in 1 : vector<32x1xf32>, vector<32x4xf32>, vector<32x1xf32> -> vector<32x6xf32>
      %c1_i32_72 = arith.constant 1 : i32
      %141 = arith.addi %arg19, %c1_i32_72 : i32
      %142 = arith.index_cast %141 : i32 to index
      %c0_73 = arith.constant 0 : index
      %c0_74 = arith.constant 0 : index
      %143 = vector.load %arg17[%142, %c0_73, %c0_74] : memref<6x32x6xf32, #tpu.memory_space<vmem>>, vector<1x32x6xf32>
      %144 = vector.shape_cast %143 : vector<1x32x6xf32> to vector<32x6xf32>
      %145 = vector.shape_cast %140 : vector<32x6xf32> to vector<1x32x6xf32>
      tpu.vector_store %arg17[%142, %c0_73, %c0_74], %145 {strides = array<i32>} : memref<6x32x6xf32, #tpu.memory_space<vmem>>, vector<1x32x6xf32>,
    }
    %c4_i32_48 = arith.constant 4 : i32
    %cst_49 = arith.constant 0.000000e+00 : f32
    %108 = vector.broadcast %cst_49 : f32 to vector<16x1xf32>
    %c0_i32_50 = arith.constant 0 : i32
    %c4_i32_51 = arith.constant 4 : i32
    %109 = arith.addi %c0_i32_50, %c4_i32_51 : i32
    %c1_i32_52 = arith.constant 1 : i32
    scf.for %arg19 = %c0_i32_50 to %109 step %c1_i32_52  : i32 {
      %111 = arith.index_cast %arg19 : i32 to index
      %c0_58 = arith.constant 0 : index
      %c0_59 = arith.constant 0 : index
      %112 = vector.load %arg17[%111, %c0_58, %c0_59] : memref<6x32x6xf32, #tpu.memory_space<vmem>>, vector<1x32x6xf32>
      %113 = vector.shape_cast %112 : vector<1x32x6xf32> to vector<32x6xf32>
      %c1_i32_60 = arith.constant 1 : i32
      %114 = arith.addi %arg19, %c1_i32_60 : i32
      %115 = arith.index_cast %114 : i32 to index
      %c0_61 = arith.constant 0 : index
      %c0_62 = arith.constant 0 : index
      %116 = vector.load %arg17[%115, %c0_61, %c0_62] : memref<6x32x6xf32, #tpu.memory_space<vmem>>, vector<1x32x6xf32>
      %117 = vector.shape_cast %116 : vector<1x32x6xf32> to vector<32x6xf32>
      %c2_i32_63 = arith.constant 2 : i32
      %118 = arith.addi %arg19, %c2_i32_63 : i32
      %119 = arith.index_cast %118 : i32 to index
      %c0_64 = arith.constant 0 : index
      %c0_65 = arith.constant 0 : index
      %120 = vector.load %arg17[%119, %c0_64, %c0_65] : memref<6x32x6xf32, #tpu.memory_space<vmem>>, vector<1x32x6xf32>
      %121 = vector.shape_cast %120 : vector<1x32x6xf32> to vector<32x6xf32>
      %c0_66 = arith.constant 0 : index
      %c0_67 = arith.constant 0 : index
      %c0_68 = arith.constant 0 : index
      %c0_69 = arith.constant 0 : index
      %122 = vector.load %arg8[%c0_66, %c0_67, %c0_68, %c0_69] : memref<2x2x16x128xbf16, #tpu.memory_space<vmem>>, vector<2x2x16x128xbf16>
      %c0_70 = arith.constant 0 : index
      %c0_71 = arith.constant 0 : index
      %123 = vector.load %arg9[%c0_70, %c0_71] : memref<16x1xf32, #tpu.memory_space<vmem>>, vector<16x1xf32>
      %124 = vector.extract_strided_slice %117 {offsets = [0, 1], sizes = [32, 4], strides = [1, 1]} : vector<32x6xf32> to vector<32x4xf32>
      %125 = vector.extract_strided_slice %117 {offsets = [0, 0], sizes = [32, 4], strides = [1, 1]} : vector<32x6xf32> to vector<32x4xf32>
      %126 = vector.extract_strided_slice %113 {offsets = [0, 1], sizes = [32, 4], strides = [1, 1]} : vector<32x6xf32> to vector<32x4xf32>
      %127 = vector.extract_strided_slice %113 {offsets = [0, 0], sizes = [32, 4], strides = [1, 1]} : vector<32x6xf32> to vector<32x4xf32>
      %128 = tpu.concatenate %124, %125, %126, %127 in 0 : vector<32x4xf32>, vector<32x4xf32>, vector<32x4xf32>, vector<32x4xf32> -> vector<128x4xf32>
      %129 = arith.truncf %128 : vector<128x4xf32> to vector<128x4xbf16>
      %130 = vector.extract_strided_slice %122 {offsets = [0, 0, 0, 0], sizes = [1, 1, 16, 128], strides = [1, 1, 1, 1]} : vector<2x2x16x128xbf16> to vector<1x1x16x128xbf16>
      %131 = vector.shape_cast %130 : vector<1x1x16x128xbf16> to vector<16x128xbf16>
      %cst_72 = arith.constant dense<0.000000e+00> : vector<16x4xf32>
      %132 = tpu.matmul %131, %129, %cst_72 {dimension_numbers = #tpu.dot_dimension_numbers<[1], [0], [0], [1], [0, 0, 1, 1], [], []>} : vector<16x128xbf16>, vector<128x4xbf16>, vector<16x4xf32> -> vector<16x4xf32>
      %133 = vector.extract_strided_slice %117 {offsets = [0, 1], sizes = [32, 4], strides = [1, 1]} : vector<32x6xf32> to vector<32x4xf32>
      %134 = vector.extract_strided_slice %117 {offsets = [0, 2], sizes = [32, 4], strides = [1, 1]} : vector<32x6xf32> to vector<32x4xf32>
      %135 = vector.extract_strided_slice %113 {offsets = [0, 1], sizes = [32, 4], strides = [1, 1]} : vector<32x6xf32> to vector<32x4xf32>
      %136 = vector.extract_strided_slice %113 {offsets = [0, 2], sizes = [32, 4], strides = [1, 1]} : vector<32x6xf32> to vector<32x4xf32>
      %137 = tpu.concatenate %133, %134, %135, %136 in 0 : vector<32x4xf32>, vector<32x4xf32>, vector<32x4xf32>, vector<32x4xf32> -> vector<128x4xf32>
      %138 = arith.truncf %137 : vector<128x4xf32> to vector<128x4xbf16>
      %139 = vector.extract_strided_slice %122 {offsets = [0, 1, 0, 0], sizes = [1, 1, 16, 128], strides = [1, 1, 1, 1]} : vector<2x2x16x128xbf16> to vector<1x1x16x128xbf16>
      %140 = vector.shape_cast %139 : vector<1x1x16x128xbf16> to vector<16x128xbf16>
      %cst_73 = arith.constant dense<0.000000e+00> : vector<16x4xf32>
      %141 = tpu.matmul %140, %138, %cst_73 {dimension_numbers = #tpu.dot_dimension_numbers<[1], [0], [0], [1], [0, 0, 1, 1], [], []>} : vector<16x128xbf16>, vector<128x4xbf16>, vector<16x4xf32> -> vector<16x4xf32>
      %142 = arith.truncf %132 : vector<16x4xf32> to vector<16x4xbf16>
      %cst_74 = arith.constant dense<0.000000e+00> : vector<16x8xf32>
      %143 = tpu.matmul %142, %49, %cst_74 {dimension_numbers = #tpu.dot_dimension_numbers<[1], [0], [0], [1], [0, 0, 1, 1], [], []>} : vector<16x4xbf16>, vector<4x8xbf16>, vector<16x8xf32> -> vector<16x8xf32>
      %144 = arith.truncf %141 : vector<16x4xf32> to vector<16x4xbf16>
      %cst_75 = arith.constant dense<0.000000e+00> : vector<16x8xf32>
      %145 = tpu.matmul %144, %59, %cst_75 {dimension_numbers = #tpu.dot_dimension_numbers<[1], [0], [0], [1], [0, 0, 1, 1], [], []>} : vector<16x4xbf16>, vector<4x8xbf16>, vector<16x8xf32> -> vector<16x8xf32>
      %146 = arith.addf %143, %145 : vector<16x8xf32>
      %147 = vector.broadcast %123 : vector<16x1xf32> to vector<16x8xf32>
      %148 = arith.addf %146, %147 : vector<16x8xf32>
      %cst_76 = arith.constant 0.000000e+00 : f32
      %149 = vector.broadcast %cst_76 : f32 to vector<16x8xf32>
      %150 = arith.maximumf %148, %149 : vector<16x8xf32>
      %151 = vector.extract_strided_slice %117 {offsets = [0, 1], sizes = [32, 4], strides = [1, 1]} : vector<32x6xf32> to vector<32x4xf32>
      %152 = vector.extract_strided_slice %117 {offsets = [0, 0], sizes = [32, 4], strides = [1, 1]} : vector<32x6xf32> to vector<32x4xf32>
      %153 = vector.extract_strided_slice %121 {offsets = [0, 1], sizes = [32, 4], strides = [1, 1]} : vector<32x6xf32> to vector<32x4xf32>
      %154 = vector.extract_strided_slice %121 {offsets = [0, 0], sizes = [32, 4], strides = [1, 1]} : vector<32x6xf32> to vector<32x4xf32>
      %155 = tpu.concatenate %151, %152, %153, %154 in 0 : vector<32x4xf32>, vector<32x4xf32>, vector<32x4xf32>, vector<32x4xf32> -> vector<128x4xf32>
      %156 = arith.truncf %155 : vector<128x4xf32> to vector<128x4xbf16>
      %157 = vector.extract_strided_slice %122 {offsets = [1, 0, 0, 0], sizes = [1, 1, 16, 128], strides = [1, 1, 1, 1]} : vector<2x2x16x128xbf16> to vector<1x1x16x128xbf16>
      %158 = vector.shape_cast %157 : vector<1x1x16x128xbf16> to vector<16x128xbf16>
      %cst_77 = arith.constant dense<0.000000e+00> : vector<16x4xf32>
      %159 = tpu.matmul %158, %156, %cst_77 {dimension_numbers = #tpu.dot_dimension_numbers<[1], [0], [0], [1], [0, 0, 1, 1], [], []>} : vector<16x128xbf16>, vector<128x4xbf16>, vector<16x4xf32> -> vector<16x4xf32>
      %160 = vector.extract_strided_slice %117 {offsets = [0, 1], sizes = [32, 4], strides = [1, 1]} : vector<32x6xf32> to vector<32x4xf32>
      %161 = vector.extract_strided_slice %117 {offsets = [0, 2], sizes = [32, 4], strides = [1, 1]} : vector<32x6xf32> to vector<32x4xf32>
      %162 = vector.extract_strided_slice %121 {offsets = [0, 1], sizes = [32, 4], strides = [1, 1]} : vector<32x6xf32> to vector<32x4xf32>
      %163 = vector.extract_strided_slice %121 {offsets = [0, 2], sizes = [32, 4], strides = [1, 1]} : vector<32x6xf32> to vector<32x4xf32>
      %164 = tpu.concatenate %160, %161, %162, %163 in 0 : vector<32x4xf32>, vector<32x4xf32>, vector<32x4xf32>, vector<32x4xf32> -> vector<128x4xf32>
      %165 = arith.truncf %164 : vector<128x4xf32> to vector<128x4xbf16>
      %166 = vector.extract_strided_slice %122 {offsets = [1, 1, 0, 0], sizes = [1, 1, 16, 128], strides = [1, 1, 1, 1]} : vector<2x2x16x128xbf16> to vector<1x1x16x128xbf16>
      %167 = vector.shape_cast %166 : vector<1x1x16x128xbf16> to vector<16x128xbf16>
      %cst_78 = arith.constant dense<0.000000e+00> : vector<16x4xf32>
      %168 = tpu.matmul %167, %165, %cst_78 {dimension_numbers = #tpu.dot_dimension_numbers<[1], [0], [0], [1], [0, 0, 1, 1], [], []>} : vector<16x128xbf16>, vector<128x4xbf16>, vector<16x4xf32> -> vector<16x4xf32>
      %169 = arith.truncf %159 : vector<16x4xf32> to vector<16x4xbf16>
      %cst_79 = arith.constant dense<0.000000e+00> : vector<16x8xf32>
      %170 = tpu.matmul %169, %49, %cst_79 {dimension_numbers = #tpu.dot_dimension_numbers<[1], [0], [0], [1], [0, 0, 1, 1], [], []>} : vector<16x4xbf16>, vector<4x8xbf16>, vector<16x8xf32> -> vector<16x8xf32>
      %171 = arith.truncf %168 : vector<16x4xf32> to vector<16x4xbf16>
      %cst_80 = arith.constant dense<0.000000e+00> : vector<16x8xf32>
      %172 = tpu.matmul %171, %59, %cst_80 {dimension_numbers = #tpu.dot_dimension_numbers<[1], [0], [0], [1], [0, 0, 1, 1], [], []>} : vector<16x4xbf16>, vector<4x8xbf16>, vector<16x8xf32> -> vector<16x8xf32>
      %173 = arith.addf %170, %172 : vector<16x8xf32>
      %174 = vector.broadcast %123 : vector<16x1xf32> to vector<16x8xf32>
      %175 = arith.addf %173, %174 : vector<16x8xf32>
      %cst_81 = arith.constant 0.000000e+00 : f32
      %176 = vector.broadcast %cst_81 : f32 to vector<16x8xf32>
      %177 = arith.maximumf %175, %176 : vector<16x8xf32>
      %178 = tpu.concatenate %108, %150, %108 in 1 : vector<16x1xf32>, vector<16x8xf32>, vector<16x1xf32> -> vector<16x10xf32>
      %c2_i32_82 = arith.constant 2 : i32
      %179 = arith.muli %c2_i32_82, %arg19 : i32
      %c1_i32_83 = arith.constant 1 : i32
      %180 = arith.addi %179, %c1_i32_83 : i32
      %181 = arith.index_cast %180 : i32 to index
      %c0_84 = arith.constant 0 : index
      %c0_85 = arith.constant 0 : index
      %182 = vector.load %arg18[%181, %c0_84, %c0_85] : memref<10x16x10xf32, #tpu.memory_space<vmem>>, vector<1x16x10xf32>
      %183 = vector.shape_cast %182 : vector<1x16x10xf32> to vector<16x10xf32>
      %184 = vector.shape_cast %178 : vector<16x10xf32> to vector<1x16x10xf32>
      tpu.vector_store %arg18[%181, %c0_84, %c0_85], %184 {strides = array<i32>} : memref<10x16x10xf32, #tpu.memory_space<vmem>>, vector<1x16x10xf32>,
      %185 = tpu.concatenate %108, %177, %108 in 1 : vector<16x1xf32>, vector<16x8xf32>, vector<16x1xf32> -> vector<16x10xf32>
      %c2_i32_86 = arith.constant 2 : i32
      %186 = arith.muli %c2_i32_86, %arg19 : i32
      %c2_i32_87 = arith.constant 2 : i32
      %187 = arith.addi %186, %c2_i32_87 : i32
      %188 = arith.index_cast %187 : i32 to index
      %c0_88 = arith.constant 0 : index
      %c0_89 = arith.constant 0 : index
      %189 = vector.load %arg18[%188, %c0_88, %c0_89] : memref<10x16x10xf32, #tpu.memory_space<vmem>>, vector<1x16x10xf32>
      %190 = vector.shape_cast %189 : vector<1x16x10xf32> to vector<16x10xf32>
      %191 = vector.shape_cast %185 : vector<16x10xf32> to vector<1x16x10xf32>
      tpu.vector_store %arg18[%188, %c0_88, %c0_89], %191 {strides = array<i32>} : memref<10x16x10xf32, #tpu.memory_space<vmem>>, vector<1x16x10xf32>,
    }
    %c4_i32_53 = arith.constant 4 : i32
    %c0_i32_54 = arith.constant 0 : i32
    %c8_i32_55 = arith.constant 8 : i32
    %110 = arith.addi %c0_i32_54, %c8_i32_55 : i32
    %c1_i32_56 = arith.constant 1 : i32
    scf.for %arg19 = %c0_i32_54 to %110 step %c1_i32_56  : i32 {
      %111 = arith.index_cast %arg19 : i32 to index
      %c0_58 = arith.constant 0 : index
      %c0_59 = arith.constant 0 : index
      %112 = vector.load %arg18[%111, %c0_58, %c0_59] : memref<10x16x10xf32, #tpu.memory_space<vmem>>, vector<1x16x10xf32>
      %113 = vector.shape_cast %112 : vector<1x16x10xf32> to vector<16x10xf32>
      %c1_i32_60 = arith.constant 1 : i32
      %114 = arith.addi %arg19, %c1_i32_60 : i32
      %115 = arith.index_cast %114 : i32 to index
      %c0_61 = arith.constant 0 : index
      %c0_62 = arith.constant 0 : index
      %116 = vector.load %arg18[%115, %c0_61, %c0_62] : memref<10x16x10xf32, #tpu.memory_space<vmem>>, vector<1x16x10xf32>
      %117 = vector.shape_cast %116 : vector<1x16x10xf32> to vector<16x10xf32>
      %c2_i32_63 = arith.constant 2 : i32
      %118 = arith.addi %arg19, %c2_i32_63 : i32
      %119 = arith.index_cast %118 : i32 to index
      %c0_64 = arith.constant 0 : index
      %c0_65 = arith.constant 0 : index
      %120 = vector.load %arg18[%119, %c0_64, %c0_65] : memref<10x16x10xf32, #tpu.memory_space<vmem>>, vector<1x16x10xf32>
      %121 = vector.shape_cast %120 : vector<1x16x10xf32> to vector<16x10xf32>
      %c0_66 = arith.constant 0 : index
      %c0_67 = arith.constant 0 : index
      %c0_68 = arith.constant 0 : index
      %c0_69 = arith.constant 0 : index
      %122 = vector.load %arg10[%c0_66, %c0_67, %c0_68, %c0_69] : memref<2x2x8x64xbf16, #tpu.memory_space<vmem>>, vector<2x2x8x64xbf16>
      %c0_70 = arith.constant 0 : index
      %c0_71 = arith.constant 0 : index
      %123 = vector.load %arg11[%c0_70, %c0_71] : memref<8x1xf32, #tpu.memory_space<vmem>>, vector<8x1xf32>
      %124 = vector.extract_strided_slice %117 {offsets = [0, 1], sizes = [16, 8], strides = [1, 1]} : vector<16x10xf32> to vector<16x8xf32>
      %125 = vector.extract_strided_slice %117 {offsets = [0, 0], sizes = [16, 8], strides = [1, 1]} : vector<16x10xf32> to vector<16x8xf32>
      %126 = vector.extract_strided_slice %113 {offsets = [0, 1], sizes = [16, 8], strides = [1, 1]} : vector<16x10xf32> to vector<16x8xf32>
      %127 = vector.extract_strided_slice %113 {offsets = [0, 0], sizes = [16, 8], strides = [1, 1]} : vector<16x10xf32> to vector<16x8xf32>
      %128 = tpu.concatenate %124, %125, %126, %127 in 0 : vector<16x8xf32>, vector<16x8xf32>, vector<16x8xf32>, vector<16x8xf32> -> vector<64x8xf32>
      %129 = arith.truncf %128 : vector<64x8xf32> to vector<64x8xbf16>
      %130 = vector.extract_strided_slice %122 {offsets = [0, 0, 0, 0], sizes = [1, 1, 8, 64], strides = [1, 1, 1, 1]} : vector<2x2x8x64xbf16> to vector<1x1x8x64xbf16>
      %131 = vector.shape_cast %130 : vector<1x1x8x64xbf16> to vector<8x64xbf16>
      %cst_72 = arith.constant dense<0.000000e+00> : vector<8x8xf32>
      %132 = tpu.matmul %131, %129, %cst_72 {dimension_numbers = #tpu.dot_dimension_numbers<[1], [0], [0], [1], [0, 0, 1, 1], [], []>} : vector<8x64xbf16>, vector<64x8xbf16>, vector<8x8xf32> -> vector<8x8xf32>
      %133 = vector.extract_strided_slice %117 {offsets = [0, 1], sizes = [16, 8], strides = [1, 1]} : vector<16x10xf32> to vector<16x8xf32>
      %134 = vector.extract_strided_slice %117 {offsets = [0, 2], sizes = [16, 8], strides = [1, 1]} : vector<16x10xf32> to vector<16x8xf32>
      %135 = vector.extract_strided_slice %113 {offsets = [0, 1], sizes = [16, 8], strides = [1, 1]} : vector<16x10xf32> to vector<16x8xf32>
      %136 = vector.extract_strided_slice %113 {offsets = [0, 2], sizes = [16, 8], strides = [1, 1]} : vector<16x10xf32> to vector<16x8xf32>
      %137 = tpu.concatenate %133, %134, %135, %136 in 0 : vector<16x8xf32>, vector<16x8xf32>, vector<16x8xf32>, vector<16x8xf32> -> vector<64x8xf32>
      %138 = arith.truncf %137 : vector<64x8xf32> to vector<64x8xbf16>
      %139 = vector.extract_strided_slice %122 {offsets = [0, 1, 0, 0], sizes = [1, 1, 8, 64], strides = [1, 1, 1, 1]} : vector<2x2x8x64xbf16> to vector<1x1x8x64xbf16>
      %140 = vector.shape_cast %139 : vector<1x1x8x64xbf16> to vector<8x64xbf16>
      %cst_73 = arith.constant dense<0.000000e+00> : vector<8x8xf32>
      %141 = tpu.matmul %140, %138, %cst_73 {dimension_numbers = #tpu.dot_dimension_numbers<[1], [0], [0], [1], [0, 0, 1, 1], [], []>} : vector<8x64xbf16>, vector<64x8xbf16>, vector<8x8xf32> -> vector<8x8xf32>
      %142 = arith.truncf %132 : vector<8x8xf32> to vector<8x8xbf16>
      %cst_74 = arith.constant dense<0.000000e+00> : vector<8x16xf32>
      %143 = tpu.matmul %142, %69, %cst_74 {dimension_numbers = #tpu.dot_dimension_numbers<[1], [0], [0], [1], [0, 0, 1, 1], [], []>} : vector<8x8xbf16>, vector<8x16xbf16>, vector<8x16xf32> -> vector<8x16xf32>
      %144 = arith.truncf %141 : vector<8x8xf32> to vector<8x8xbf16>
      %cst_75 = arith.constant dense<0.000000e+00> : vector<8x16xf32>
      %145 = tpu.matmul %144, %79, %cst_75 {dimension_numbers = #tpu.dot_dimension_numbers<[1], [0], [0], [1], [0, 0, 1, 1], [], []>} : vector<8x8xbf16>, vector<8x16xbf16>, vector<8x16xf32> -> vector<8x16xf32>
      %146 = arith.addf %143, %145 : vector<8x16xf32>
      %147 = vector.broadcast %123 : vector<8x1xf32> to vector<8x16xf32>
      %148 = arith.addf %146, %147 : vector<8x16xf32>
      %cst_76 = arith.constant 0.000000e+00 : f32
      %149 = vector.broadcast %cst_76 : f32 to vector<8x16xf32>
      %150 = arith.maximumf %148, %149 : vector<8x16xf32>
      %151 = vector.extract_strided_slice %117 {offsets = [0, 1], sizes = [16, 8], strides = [1, 1]} : vector<16x10xf32> to vector<16x8xf32>
      %152 = vector.extract_strided_slice %117 {offsets = [0, 0], sizes = [16, 8], strides = [1, 1]} : vector<16x10xf32> to vector<16x8xf32>
      %153 = vector.extract_strided_slice %121 {offsets = [0, 1], sizes = [16, 8], strides = [1, 1]} : vector<16x10xf32> to vector<16x8xf32>
      %154 = vector.extract_strided_slice %121 {offsets = [0, 0], sizes = [16, 8], strides = [1, 1]} : vector<16x10xf32> to vector<16x8xf32>
      %155 = tpu.concatenate %151, %152, %153, %154 in 0 : vector<16x8xf32>, vector<16x8xf32>, vector<16x8xf32>, vector<16x8xf32> -> vector<64x8xf32>
      %156 = arith.truncf %155 : vector<64x8xf32> to vector<64x8xbf16>
      %157 = vector.extract_strided_slice %122 {offsets = [1, 0, 0, 0], sizes = [1, 1, 8, 64], strides = [1, 1, 1, 1]} : vector<2x2x8x64xbf16> to vector<1x1x8x64xbf16>
      %158 = vector.shape_cast %157 : vector<1x1x8x64xbf16> to vector<8x64xbf16>
      %cst_77 = arith.constant dense<0.000000e+00> : vector<8x8xf32>
      %159 = tpu.matmul %158, %156, %cst_77 {dimension_numbers = #tpu.dot_dimension_numbers<[1], [0], [0], [1], [0, 0, 1, 1], [], []>} : vector<8x64xbf16>, vector<64x8xbf16>, vector<8x8xf32> -> vector<8x8xf32>
      %160 = vector.extract_strided_slice %117 {offsets = [0, 1], sizes = [16, 8], strides = [1, 1]} : vector<16x10xf32> to vector<16x8xf32>
      %161 = vector.extract_strided_slice %117 {offsets = [0, 2], sizes = [16, 8], strides = [1, 1]} : vector<16x10xf32> to vector<16x8xf32>
      %162 = vector.extract_strided_slice %121 {offsets = [0, 1], sizes = [16, 8], strides = [1, 1]} : vector<16x10xf32> to vector<16x8xf32>
      %163 = vector.extract_strided_slice %121 {offsets = [0, 2], sizes = [16, 8], strides = [1, 1]} : vector<16x10xf32> to vector<16x8xf32>
      %164 = tpu.concatenate %160, %161, %162, %163 in 0 : vector<16x8xf32>, vector<16x8xf32>, vector<16x8xf32>, vector<16x8xf32> -> vector<64x8xf32>
      %165 = arith.truncf %164 : vector<64x8xf32> to vector<64x8xbf16>
      %166 = vector.extract_strided_slice %122 {offsets = [1, 1, 0, 0], sizes = [1, 1, 8, 64], strides = [1, 1, 1, 1]} : vector<2x2x8x64xbf16> to vector<1x1x8x64xbf16>
      %167 = vector.shape_cast %166 : vector<1x1x8x64xbf16> to vector<8x64xbf16>
      %cst_78 = arith.constant dense<0.000000e+00> : vector<8x8xf32>
      %168 = tpu.matmul %167, %165, %cst_78 {dimension_numbers = #tpu.dot_dimension_numbers<[1], [0], [0], [1], [0, 0, 1, 1], [], []>} : vector<8x64xbf16>, vector<64x8xbf16>, vector<8x8xf32> -> vector<8x8xf32>
      %169 = arith.truncf %159 : vector<8x8xf32> to vector<8x8xbf16>
      %cst_79 = arith.constant dense<0.000000e+00> : vector<8x16xf32>
      %170 = tpu.matmul %169, %69, %cst_79 {dimension_numbers = #tpu.dot_dimension_numbers<[1], [0], [0], [1], [0, 0, 1, 1], [], []>} : vector<8x8xbf16>, vector<8x16xbf16>, vector<8x16xf32> -> vector<8x16xf32>
      %171 = arith.truncf %168 : vector<8x8xf32> to vector<8x8xbf16>
      %cst_80 = arith.constant dense<0.000000e+00> : vector<8x16xf32>
      %172 = tpu.matmul %171, %79, %cst_80 {dimension_numbers = #tpu.dot_dimension_numbers<[1], [0], [0], [1], [0, 0, 1, 1], [], []>} : vector<8x8xbf16>, vector<8x16xbf16>, vector<8x16xf32> -> vector<8x16xf32>
      %173 = arith.addf %170, %172 : vector<8x16xf32>
      %174 = vector.broadcast %123 : vector<8x1xf32> to vector<8x16xf32>
      %175 = arith.addf %173, %174 : vector<8x16xf32>
      %cst_81 = arith.constant 0.000000e+00 : f32
      %176 = vector.broadcast %cst_81 : f32 to vector<8x16xf32>
      %177 = arith.maximumf %175, %176 : vector<8x16xf32>
      %c0_82 = arith.constant 0 : index
      %c0_83 = arith.constant 0 : index
      %178 = vector.load %arg12[%c0_82, %c0_83] : memref<2x8xbf16, #tpu.memory_space<vmem>>, vector<2x8xbf16>
      %c0_84 = arith.constant 0 : index
      %c0_85 = arith.constant 0 : index
      %179 = vector.load %arg13[%c0_84, %c0_85] : memref<2x1xf32, #tpu.memory_space<vmem>>, vector<2x1xf32>
      %180 = arith.truncf %150 : vector<8x16xf32> to vector<8x16xbf16>
      %cst_86 = arith.constant dense<0.000000e+00> : vector<2x16xf32>
      %181 = tpu.matmul %178, %180, %cst_86 {dimension_numbers = #tpu.dot_dimension_numbers<[1], [0], [0], [1], [0, 0, 1, 1], [], []>} : vector<2x8xbf16>, vector<8x16xbf16>, vector<2x16xf32> -> vector<2x16xf32>
      %182 = vector.broadcast %179 : vector<2x1xf32> to vector<2x16xf32>
      %183 = arith.addf %181, %182 : vector<2x16xf32>
      %cst_87 = arith.constant 0.000000e+00 : f32
      %184 = vector.broadcast %cst_87 : f32 to vector<2x16xf32>
      %185 = arith.maximumf %183, %184 : vector<2x16xf32>
      %c2_i32_88 = arith.constant 2 : i32
      %186 = arith.muli %c2_i32_88, %arg19 : i32
      %187 = arith.index_cast %186 : i32 to index
      %c0_89 = arith.constant 0 : index
      %c0_90 = arith.constant 0 : index
      %188 = vector.load %arg14[%187, %c0_89, %c0_90] : memref<16x2x16xf32, #tpu.memory_space<vmem>>, vector<1x2x16xf32>
      %189 = vector.shape_cast %188 : vector<1x2x16xf32> to vector<2x16xf32>
      %190 = vector.shape_cast %185 : vector<2x16xf32> to vector<1x2x16xf32>
      tpu.vector_store %arg14[%187, %c0_89, %c0_90], %190 {strides = array<i32>} : memref<16x2x16xf32, #tpu.memory_space<vmem>>, vector<1x2x16xf32>,
      %191 = arith.truncf %177 : vector<8x16xf32> to vector<8x16xbf16>
      %cst_91 = arith.constant dense<0.000000e+00> : vector<2x16xf32>
      %192 = tpu.matmul %178, %191, %cst_91 {dimension_numbers = #tpu.dot_dimension_numbers<[1], [0], [0], [1], [0, 0, 1, 1], [], []>} : vector<2x8xbf16>, vector<8x16xbf16>, vector<2x16xf32> -> vector<2x16xf32>
      %193 = vector.broadcast %179 : vector<2x1xf32> to vector<2x16xf32>
      %194 = arith.addf %192, %193 : vector<2x16xf32>
      %cst_92 = arith.constant 0.000000e+00 : f32
      %195 = vector.broadcast %cst_92 : f32 to vector<2x16xf32>
      %196 = arith.maximumf %194, %195 : vector<2x16xf32>
      %c2_i32_93 = arith.constant 2 : i32
      %197 = arith.muli %c2_i32_93, %arg19 : i32
      %c1_i32_94 = arith.constant 1 : i32
      %198 = arith.addi %197, %c1_i32_94 : i32
      %199 = arith.index_cast %198 : i32 to index
      %c0_95 = arith.constant 0 : index
      %c0_96 = arith.constant 0 : index
      %200 = vector.load %arg14[%199, %c0_95, %c0_96] : memref<16x2x16xf32, #tpu.memory_space<vmem>>, vector<1x2x16xf32>
      %201 = vector.shape_cast %200 : vector<1x2x16xf32> to vector<2x16xf32>
      %202 = vector.shape_cast %196 : vector<2x16xf32> to vector<1x2x16xf32>
      tpu.vector_store %arg14[%199, %c0_95, %c0_96], %202 {strides = array<i32>} : memref<16x2x16xf32, #tpu.memory_space<vmem>>, vector<1x2x16xf32>,
    }
    %c8_i32_57 = arith.constant 8 : i32
    return
  }
  func.func @transform_0(%arg0: i32) -> (i32, i32, i32) {
    %c0_i32 = arith.constant 0 : i32
    %c0_i32_0 = arith.constant 0 : i32
    %c0_i32_1 = arith.constant 0 : i32
    return %arg0, %c0_i32, %c0_i32_0 : i32, i32, i32
  }
  func.func @transform_1(%arg0: i32) -> (i32, i32) {
    %c0_i32 = arith.constant 0 : i32
    %c0_i32_0 = arith.constant 0 : i32
    %c0_i32_1 = arith.constant 0 : i32
    return %c0_i32, %c0_i32_0 : i32, i32
  }
  func.func @transform_2(%arg0: i32) -> (i32, i32) {
    %c0_i32 = arith.constant 0 : i32
    %c0_i32_0 = arith.constant 0 : i32
    %c0_i32_1 = arith.constant 0 : i32
    return %c0_i32, %c0_i32_0 : i32, i32
  }
  func.func @transform_3(%arg0: i32) -> (i32, i32) {
    %c0_i32 = arith.constant 0 : i32
    %c0_i32_0 = arith.constant 0 : i32
    %c0_i32_1 = arith.constant 0 : i32
    return %c0_i32, %c0_i32_0 : i32, i32
  }
  func.func @transform_4(%arg0: i32) -> (i32, i32) {
    %c0_i32 = arith.constant 0 : i32
    %c0_i32_0 = arith.constant 0 : i32
    %c0_i32_1 = arith.constant 0 : i32
    return %c0_i32, %c0_i32_0 : i32, i32
  }
  func.func @transform_5(%arg0: i32) -> (i32, i32) {
    %c0_i32 = arith.constant 0 : i32
    %c0_i32_0 = arith.constant 0 : i32
    %c0_i32_1 = arith.constant 0 : i32
    return %c0_i32, %c0_i32_0 : i32, i32
  }
  func.func @transform_6(%arg0: i32) -> (i32, i32) {
    %c0_i32 = arith.constant 0 : i32
    %c0_i32_0 = arith.constant 0 : i32
    %c0_i32_1 = arith.constant 0 : i32
    return %c0_i32, %c0_i32_0 : i32, i32
  }
  func.func @transform_7(%arg0: i32) -> (i32, i32, i32, i32) {
    %c0_i32 = arith.constant 0 : i32
    %c0_i32_0 = arith.constant 0 : i32
    %c0_i32_1 = arith.constant 0 : i32
    %c0_i32_2 = arith.constant 0 : i32
    %c0_i32_3 = arith.constant 0 : i32
    return %c0_i32, %c0_i32_0, %c0_i32_1, %c0_i32_2 : i32, i32, i32, i32
  }
  func.func @transform_8(%arg0: i32) -> (i32, i32) {
    %c0_i32 = arith.constant 0 : i32
    %c0_i32_0 = arith.constant 0 : i32
    %c0_i32_1 = arith.constant 0 : i32
    return %c0_i32, %c0_i32_0 : i32, i32
  }
  func.func @transform_9(%arg0: i32) -> (i32, i32, i32, i32) {
    %c0_i32 = arith.constant 0 : i32
    %c0_i32_0 = arith.constant 0 : i32
    %c0_i32_1 = arith.constant 0 : i32
    %c0_i32_2 = arith.constant 0 : i32
    %c0_i32_3 = arith.constant 0 : i32
    return %c0_i32, %c0_i32_0, %c0_i32_1, %c0_i32_2 : i32, i32, i32, i32
  }
  func.func @transform_10(%arg0: i32) -> (i32, i32) {
    %c0_i32 = arith.constant 0 : i32
    %c0_i32_0 = arith.constant 0 : i32
    %c0_i32_1 = arith.constant 0 : i32
    return %c0_i32, %c0_i32_0 : i32, i32
  }
  func.func @transform_11(%arg0: i32) -> (i32, i32) {
    %c0_i32 = arith.constant 0 : i32
    %c0_i32_0 = arith.constant 0 : i32
    %c0_i32_1 = arith.constant 0 : i32
    return %c0_i32, %c0_i32_0 : i32, i32
  }
  func.func @transform_12(%arg0: i32) -> (i32, i32) {
    %c0_i32 = arith.constant 0 : i32
    %c0_i32_0 = arith.constant 0 : i32
    %c0_i32_1 = arith.constant 0 : i32
    return %c0_i32, %c0_i32_0 : i32, i32
  }
  func.func @transform_13(%arg0: i32) -> (i32, i32, i32) {
    %c0_i32 = arith.constant 0 : i32
    %c0_i32_0 = arith.constant 0 : i32
    %c0_i32_1 = arith.constant 0 : i32
    return %arg0, %c0_i32, %c0_i32_0 : i32, i32, i32
  }
}

</mosaic_0001>

<bundles_post_ra>
// kernel: net_forward.1
= control target key start
LH: loop header
LB: loop body
LE: loop exit
PB: predicated region body
PF: predicated region fallthrough
CT: control target
= control target key end

     0   :  { %s3656_s25 = smov 0   ;;  %s4387_s0 = inlined_call_operand.vmem [shape: f32[36,2,18], index: 0, kind: input, shape index: {}]   ;;  %s4388_s1 = inlined_call_operand.vmem [shape: bf16[8,18], index: 1, kind: input, shape index: {}]   ;;  %s4389_s2 = inlined_call_operand.vmem [shape: f32[8,1], index: 2, kind: input, shape index: {}]   ;;  %s4390_s3 = inlined_call_operand.vmem [shape: bf16[16,72], index: 3, kind: input, shape index: {}]   ;;  %s4391_s4 = inlined_call_operand.vmem [shape: f32[16,1], index: 4, kind: input, shape index: {}]   ;;  %s4392_s5 = inlined_call_operand.vmem [shape: bf16[32,144], index: 5, kind: input, shape index: {}]   ;;  %s4393_s6 = inlined_call_operand.vmem [shape: f32[32,1], index: 6, kind: input, shape index: {}]   ;;  %s4394_s7 = inlined_call_operand.vmem [shape: bf16[2,2,16,128], index: 7, kind: input, shape index: {}]   ;;  %s4395_s8 = inlined_call_operand.vmem [shape: f32[16,1], index: 8, kind: input, shape index: {}]   ;;  %s4396_s9 = inlined_call_operand.vmem [shape: bf16[2,2,8,64], index: 9, kind: input, shape index: {}]   ;;  %s4397_s10 = inlined_call_operand.vmem [shape: f32[8,1], index: 10, kind: input, shape index: {}]   ;;  %s4398_s11 = inlined_call_operand.vmem [shape: bf16[2,8], index: 11, kind: input, shape index: {}]   ;;  %s4399_s12 = inlined_call_operand.vmem [shape: f32[2,1], index: 12, kind: input, shape index: {}]   ;;  %s4400_s13 = inlined_call_operand.vmem [shape: f32[32,2,16], index: 13, kind: output, shape index: {}]  }
   0x1 LB: > { %s2739_s26 = sadd.s32 4294967295, %s3534_s25   ;;  %p2743_p0 = scmp.ge.s32.totalorder %s3534_s25, 1  ;;  %s3534_s25 = sphi %s3656_s25, %s23_s25  }
   0x2   : > { %p388_p1 = scmp.lt.s32.totalorder %s3534_s25, 3 }
   0x4   : > { %p389_p2 = pnand %p2743_p0, %p388_p1 }
   0x5   : > { %s3664_s27 = smul.u32 (!%p389_p2), 18, %s2739_s26  ;;  %s3666_s28 = sshll.u32 (!%p389_p2), %s2739_s26, 4 }
   0x6   : > { %392 = sbr.rel (%p389_p2) target bundleno = 3971 (0xf83), region = 72  ;;  %p439_p3 = scmp.lt.s32.totalorder (!%p389_p2), %s3666_s28, 31 }
   0x7   : > { %p433_p4 = scmp.lt.s32.totalorder (!%p389_p2), %s3664_s27, 35  ;;  %s3813_s20 = smov (!%p389_p2), 0  }
   0xb   : > { %v445_v0 = vlaneseq  ;;  %vm478_vm0 = vcmask 48128   ;;  %vm503_vm1 = vcmask 80896   ;;  %v3556_v1 = vmov 0.0   ;;  %s4402_s28 = smov (!%p439_p3, %s3666_s28), 31  ;;  %s4404_s27 = smov (!%p433_p4, %s3664_s27), 35 }
   0xc   : > { %479 = vst.msk [vmem:[#allocation4] sm:$0xff] %vm478_vm0, %v3556_v1  ;;  %480 = vst.msk [vmem:[#allocation4 + $0x8] sm:$0xff] %vm478_vm0, %v3556_v1  ;;  %s2746_s29 = sshll.u32 %s4402_s28, 1  ;;  %s2744_s30 = sshll.u32 %s4404_s27, 1 }
   0xd   : > { %481 = vst.msk [vmem:[#allocation4 + $0x10] sm:$0xff] %vm478_vm0, %v3556_v1  ;;  %482 = vst.msk [vmem:[#allocation4 + $0x18] sm:$0xff] %vm478_vm0, %v3556_v1  ;;  %v3758_v2 = vshrl.u32 %v445_v0, 7  ;;  %v449_v3 = vand.u32 127, %v445_v0  ;;  %s3773_s16 = scalar_lea.vmem %s4400_s13, %s2746_s29  ;;  %s3785_s19 = scalar_lea.vmem %s4387_s0, %s2744_s30 }
   0xe   : > { %483 = vst.msk [vmem:[#allocation4 + $0x20] sm:$0xff] %vm478_vm0, %v3556_v1  ;;  %484 = vst.msk [vmem:[#allocation4 + $0x28] sm:$0xff] %vm478_vm0, %v3556_v1 }
   0xf   : > { %485 = vst.msk [vmem:[#allocation4 + $0x30] sm:$0xff] %vm478_vm0, %v3556_v1  ;;  %486 = vst.msk [vmem:[#allocation4 + $0x38] sm:$0xff] %vm478_vm0, %v3556_v1  ;;  %v3765_v4 = vadd.s32 8, %v3758_v2  ;;  %v3767_v5 = vmul.u32 2, %v449_v3  ;;  %v468_v6 = vmul.u32 2, %v3758_v2 }
  0x10   : > { %487 = vst.msk [vmem:[#allocation4 + $0x40] sm:$0xff] %vm478_vm0, %v3556_v1  ;;  %488 = vst.msk [vmem:[#allocation4 + $0x48] sm:$0xff] %vm478_vm0, %v3556_v1 }
  0x11   : > { %489 = vst.msk [vmem:[#allocation4 + $0x50] sm:$0xff] %vm478_vm0, %v3556_v1  ;;  %490 = vst.msk [vmem:[#allocation4 + $0x58] sm:$0xff] %vm478_vm0, %v3556_v1  ;;  %vm451_vm2 = vcmp.eq.s32.totalorder %v3758_v2, %v3767_v5  ;;  %vm452_vm3 = vcmp.eq.s32.totalorder %v3765_v4, %v3767_v5  ;;  %v3780_v7 = vadd.s32 1, %v3767_v5  ;;  %vm469_vm4 = vcmp.eq.s32.totalorder %v449_v3, %v468_v6 }
  0x12   : > { %491 = vst.msk [vmem:[#allocation4 + $0x60] sm:$0xff] %vm478_vm0, %v3556_v1  ;;  %492 = vst.msk [vmem:[#allocation4 + $0x68] sm:$0xff] %vm478_vm0, %v3556_v1  ;;  %v3791_v8 = vsel %vm451_vm2, 1.0, %v3556_v1  ;;  %v2751_v9 = vsel %vm469_vm4, 1.0, %v3556_v1  ;;  %v473_v10 = vadd.s32 1, %v468_v6 }
  0x13   : > { %493 = vst.msk [vmem:[#allocation4 + $0x70] sm:$0xff] %vm478_vm0, %v3556_v1  ;;  %494 = vst.msk [vmem:[#allocation4 + $0x78] sm:$0xff] %vm478_vm0, %v3556_v1  ;;  %vm459_vm5 = vcmp.eq.s32.totalorder %v3758_v2, %v3780_v7  ;;  %vm460_vm6 = vcmp.eq.s32.totalorder %v3765_v4, %v3780_v7  ;;  %v466_v11 = vpack.c.bf16 %v3791_v8, %v3791_v8 }
  0x14   : > { %495 = vst.msk [vmem:[#allocation4 + $0x80] sm:$0xff] %vm478_vm0, %v3556_v1  ;;  %496 = vst.msk [vmem:[#allocation4 + $0x88] sm:$0xff] %vm478_vm0, %v3556_v1  ;;  %v3800_v12 = vpack.c.bf16 %v2751_v9, %v2751_v9  ;;  %v3806_v13 = vsel %vm459_vm5, 1.0, %v3556_v1  ;;  %vm474_vm7 = vcmp.eq.s32.totalorder %v449_v3, %v473_v10 }
  0x15   : > { %497 = vst.msk [vmem:[#allocation4 + $0x90] sm:$0xff] %vm478_vm0, %v3556_v1  ;;  %498 = vst.msk [vmem:[#allocation4 + $0x98] sm:$0xff] %vm478_vm0, %v3556_v1  ;;  %v467_v14 = vpack.c.bf16 %v3806_v13, %v3806_v13  ;;  %v2752_v15 = vsel %vm474_vm7, 1.0, %v3556_v1 }
  0x16   : > { %499 = vst.msk [vmem:[#allocation4 + $0xa0] sm:$0xff] %vm478_vm0, %v3556_v1  ;;  %500 = vst.msk [vmem:[#allocation4 + $0xa8] sm:$0xff] %vm478_vm0, %v3556_v1  ;;  %v3811_v16 = vpack.c.bf16 %v2752_v15, %v2752_v15 }
  0x17   : > { %501 = vst.msk [vmem:[#allocation4 + $0xb0] sm:$0xff] %vm478_vm0, %v3556_v1  ;;  %502 = vst.msk [vmem:[#allocation4 + $0xb8] sm:$0xff] %vm478_vm0, %v3556_v1 }
  0x18   : > { %504 = vst.msk [vmem:[#allocation5] sm:$0xff] %vm503_vm1, %v3556_v1  ;;  %505 = vst.msk [vmem:[#allocation5 + $0x8] sm:$0xff] %vm503_vm1, %v3556_v1 }
  0x19   : > { %506 = vst.msk [vmem:[#allocation5 + $0x10] sm:$0xff] %vm503_vm1, %v3556_v1  ;;  %507 = vst.msk [vmem:[#allocation5 + $0x18] sm:$0xff] %vm503_vm1, %v3556_v1 }
  0x1a   : > { %508 = vst.msk [vmem:[#allocation5 + $0x20] sm:$0xff] %vm503_vm1, %v3556_v1  ;;  %509 = vst.msk [vmem:[#allocation5 + $0x28] sm:$0xff] %vm503_vm1, %v3556_v1 }
  0x1b   : > { %510 = vst.msk [vmem:[#allocation5 + $0x30] sm:$0xff] %vm503_vm1, %v3556_v1  ;;  %511 = vst.msk [vmem:[#allocation5 + $0x38] sm:$0xff] %vm503_vm1, %v3556_v1 }
  0x1c   : > { %512 = vst.msk [vmem:[#allocation5 + $0x40] sm:$0xff] %vm503_vm1, %v3556_v1  ;;  %513 = vst.msk [vmem:[#allocation5 + $0x48] sm:$0xff] %vm503_vm1, %v3556_v1 }
  0x1d   : > { %514 = vst.msk [vmem:[#allocation5 + $0x50] sm:$0xff] %vm503_vm1, %v3556_v1  ;;  %515 = vst.msk [vmem:[#allocation5 + $0x58] sm:$0xff] %vm503_vm1, %v3556_v1 }
  0x1e   : > { %516 = vst.msk [vmem:[#allocation5 + $0x60] sm:$0xff] %vm503_vm1, %v3556_v1  ;;  %517 = vst.msk [vmem:[#allocation5 + $0x68] sm:$0xff] %vm503_vm1, %v3556_v1 }
  0x1f   : > { %518 = vst.msk [vmem:[#allocation5 + $0x70] sm:$0xff] %vm503_vm1, %v3556_v1  ;;  %519 = vst.msk [vmem:[#allocation5 + $0x78] sm:$0xff] %vm503_vm1, %v3556_v1 }
  0x20   : > { %520 = vst.msk [vmem:[#allocation5 + $0x80] sm:$0xff] %vm503_vm1, %v3556_v1  ;;  %521 = vst.msk [vmem:[#allocation5 + $0x88] sm:$0xff] %vm503_vm1, %v3556_v1 }
  0x21   : > { %522 = vst.msk [vmem:[#allocation5 + $0x90] sm:$0xff] %vm503_vm1, %v3556_v1  ;;  %523 = vst.msk [vmem:[#allocation5 + $0x98] sm:$0xff] %vm503_vm1, %v3556_v1 }
  0x22 LB: >> { %v3557_v17 = vmov 0.0   ;;  %s2862_s21 = sshll.u32 %s3538_s20, 2  ;;  %s3558_s23 = smov 126   ;;  %vm3559_vm8 = vmmov 0   ;;  %vm587_vm9 = vcmask 1040384   ;;  %vm571_vm10 = vcmask 1041408   ;;  %vm2766_vm14 = vmpackc.low %vm452_vm3, %vm451_vm2  ;;  %s3538_s20 = sphi %s3813_s20, %s529_s20  }
  0x23   : >> { %2976 = vmatprep.subr.bf16.mxu0 %v3557_v17  ;;  %2984 = vmatprep.subr.bf16.mxu1 %v3557_v17  ;;  %s532_s22 = scalar_lea.vmem %s3785_s19, %s2862_s21  ;;  %s3560_s24 = smov 127   ;;  %vm573_vm11 = vcmask 1043456   ;;  %vm575_vm12 = vcmask 1045504   ;;  %vm583_vm13 = vcmask 146432   ;;  %vm2769_vm15 = vmpackc.low %vm460_vm6, %vm459_vm5  ;;  %vm713_vm4 = vcmask 130048  }
  0x24   : >> { %v3822_v18 = vld [vmem:[%s532_s22 + $0x4] sm:$0x3]  ;;  %v3824_v19 = vld [vmem:[%s532_s22 + $0x6] sm:$0x3]  ;;  %v3826_v20 = vld [vmem:[%s532_s22 + $0x2] sm:$0x3]  ;;  %2980 = vmatprep.mubr.msk.bf16.mxu0 %vm3559_vm8, %v3557_v17  ;;  %2988 = vmatprep.mubr.msk.bf16.mxu1 %vm3559_vm8, %v3557_v17 }
  0x25   : >> { %v3328_v21 = vpack.i.bf16 %v3824_v19, %v3822_v18  ;;  %v557_v22 = vrot.slane %v3826_v20, 6  ;;  %v646_v23 = vrot.slane %v3822_v18, 6  ;;  %v533_v24 = vld [vmem:[%s532_s22] sm:$0x3]  ;;  %v638_v28 = vrot.slane %v3826_v20, 4  ;;  %s3563_s30 = smov 3  }
  0x26   : >> { %v543_v25 = vrot.slane %v533_v24, 6  ;;  %v547_v27 = vrot.slane %v533_v24, 4  ;;  %v564_v31 = vrot.slane %v3822_v18, 2  ;;  %v653_v32 = vrot.slane %v3824_v19, 2  ;;  %s3564_s14 = smov 1   ;;  %s2772_s15 = sshll.u32 %s3538_s20, 3 }
  0x27   : >> { %3329 = vrot.lane.b32.xlu0 %v3328_v21, %s3558_s23  ;;  %v3338_v26 = vpack.i.bf16 %v646_v23, %v557_v22  ;;  %v3343_v30 = vpack.i.bf16 %v3822_v18, %v557_v22  ;;  %v651_v48 = vrot.slane %v3824_v19, 4  ;;  %v552_v54 = vrot.slane %v3826_v20, 2  ;;  %v582_v21 = vld [vmem:[%s4388_s1] sm:$0xf]  ;;  %s2630_s17 = scalar_lea.vmem [#allocation2], %s2772_s15  ;;  %s529_s20 = sadd.s32 1, %s3538_s20  }
  0x28   : >> { %v3333_v29 = vpack.i.bf16 %v3826_v20, %v543_v25  ;;  %v3348_v33 = vpack.i.bf16 %v638_v28, %v547_v27  ;;  %v3353_v34 = vpack.i.bf16 %v653_v32, %v564_v31  ;;  %v562_v55 = vrot.slane %v3822_v18, 4  ;;  %v798_v23 = vld [vmem:[%s4389_s2] sm:$0xff]  ;;  %p526_p5 = scmp.ge.s32.totalorder %s529_s20, 8  }
  0x29   : >> { %3339 = vrot.lane.b32.xlu1 %v3338_v26, %s3558_s23  ;;  %v3561_v22 = vmov 1.0|1.0   ;;  %vm816_vm7 = vcmask 7168   ;;  %s3898_s18 = smov (%p526_p5), 0  }
  0x2b   : >> { %3334 = vrot.lane.b32.xlu0 %v3333_v29, %s3560_s24 }
  0x2d   : >> { %3344 = vrot.lane.b32.xlu1 %v3343_v30, %s3560_s24 }
  0x2f   : >> { %3349 = vrot.lane.b32.xlu0 %v3348_v33, %s3558_s23 }
  0x31   : >> { %3354 = vrot.lane.b32.xlu1 %v3353_v34, %s3560_s24 }
  0x99   : >> { %v3330_v35 = vpop.permute.xlu0 %3329 }
  0x9a   : >> { %v3332_v36 = vunpack.i.h.bf16 %v3330_v35  ;;  %v3331_v37 = vunpack.i.l.bf16 %v3330_v35 }
  0x9b   : >> { %v3340_v38 = vpop.permute.xlu1 %3339 }
  0x9c   : >> { %v667_v39 = vpack.c.bf16 %v3332_v36, %v3332_v36  ;;  %v581_v40 = vpack.c.bf16 %v3331_v37, %v3331_v37  ;;  %v3341_v45 = vunpack.i.l.bf16 %v3340_v38  ;;  %v3342_v49 = vunpack.i.h.bf16 %v3340_v38 }
  0x9d   : >> { %v3335_v41 = vpop.permute.xlu0 %3334 }
  0x9e   : >> { %v3337_v42 = vunpack.i.h.bf16 %v3335_v41  ;;  %v589_v43 = vsel %vm587_vm9, %v581_v40, 0  ;;  %v669_v44 = vsel %vm587_vm9, %v667_v39, 0  ;;  %v3336_v46 = vunpack.i.l.bf16 %v3335_v41 }
  0x9f   : >> { %v3345_v47 = vpop.permute.xlu1 %3344  ;;  %2977 = vmatpush3.bf16.msra.mxu0 %v589_v43  ;;  %2985 = vmatpush3.bf16.msra.mxu1 %v669_v44 }
  0xa0   : >> { %v3347_v50 = vunpack.i.h.bf16 %v3345_v47  ;;  %v3346_v51 = vunpack.i.l.bf16 %v3345_v47  ;;  %2978 = vmatprep.subr.bf16.mxu0 %v3557_v17  ;;  %2986 = vmatprep.subr.bf16.mxu1 %v3557_v17  ;;  %v577_v52 = vsel %vm571_vm10, %v3337_v42, %v3341_v45  ;;  %v572_v60 = vsel %vm571_vm10, %v533_v24, %v3336_v46 }
  0xa1   : >> { %v3350_v53 = vpop.permute.xlu0 %3349  ;;  %v578_v6 = vsel %vm573_vm11, %v577_v52, %v562_v55  ;;  %v3562_v24 = vmov 0  }
  0xa2   : >> { %v660_v56 = vsel %vm571_vm10, %v3826_v20, %v3346_v51  ;;  %v663_v57 = vsel %vm571_vm10, %v3347_v50, %v3342_v49  ;;  %v3352_v58 = vunpack.i.h.bf16 %v3350_v53  ;;  %v3351_v59 = vunpack.i.l.bf16 %v3350_v53  ;;  %3358 = vset.pattern.permute.xlu0 %v3562_v24 }
  0xa3   : >> { %v3355_v61 = vpop.permute.xlu1 %3354  ;;  %v664_v10 = vsel %vm573_vm11, %v663_v57, %v651_v48  ;;  %801 = vperm.xlu0 %3358, %v798_v23  }
  0xa4   : >> { %v661_v62 = vsel %vm573_vm11, %v660_v56, %v3352_v58  ;;  %v574_v63 = vsel %vm573_vm11, %v572_v60, %v3351_v59  ;;  %v3357_v0 = vunpack.i.h.bf16 %v3355_v61  ;;  %v3356_v1 = vunpack.i.l.bf16 %v3355_v61 }
  0xa5   : >> { %v576_v3 = vsel %vm575_vm12, %v574_v63, %v552_v54  ;;  %v662_v9 = vsel %vm575_vm12, %v661_v62, %v564_v31 }
  0xa6   : >> { %v579_v15 = vsel %vm575_vm12, %v578_v6, %v3356_v1  ;;  %v665_v18 = vsel %vm575_vm12, %v664_v10, %v3357_v0 }
  0xa7   : >> { %v580_v19 = vpack.c.bf16 %v579_v15, %v576_v3  ;;  %v666_v20 = vpack.c.bf16 %v665_v18, %v662_v9 }
  0xa9   : >> { %2979 = vmatpush3.bf16.msra.mxu0 %v580_v19  ;;  %2987 = vmatpush3.bf16.msra.mxu1 %v666_v20 }
  0xaa   : >> { %2992 = vmatprep.subr.bf16.mxu0 %v3557_v17  ;;  %2998 = vmatprep.subr.bf16.mxu1 %v3557_v17 }
  0xac   : >> { %2981 = vmatmul.mubr.msk.bf16.vlgmr.msra.gmra.mxu0 %vm583_vm13, %v582_v21  ;;  %2989 = vmatmul.mubr.msk.bf16.vlgmr.msra.gmra.mxu1 %vm583_vm13, %v582_v21 }
  0xad   : >> { %2993 = vmatpush3.bf16.msk.msra.mxu0 %vm2766_vm14, %v3561_v22  ;;  %2999 = vmatpush3.bf16.msk.msra.mxu1 %vm2769_vm15, %v3561_v22 }
  0xae   : >> { %2994 = vmatprep.mubr.msk.bf16.mxu0 %vm3559_vm8, %v3557_v17  ;;  %3000 = vmatprep.mubr.msk.bf16.mxu1 %vm3559_vm8, %v3557_v17  ;;  %vm818_vm8 = vcmask 72704  }
 0x11e   : >> { %v802_v34 = vpop.permute.xlu0 %801 }
 0x16c   : >> { %v625_v25 = vpop.f32.mrf.mxu0  ;;  %v705_v26 = vpop.f32.mrf.mxu1 }
 0x16d   : >> { %v711_v27 = vmax.f32 %v625_v25, %v705_v26 }
 0x16e   : >> { %v2982_v28 = vpop.f32.mrf.mxu0  ;;  %v2990_v29 = vpop.f32.mrf.mxu1 }
 0x16f   : >> { %v712_v30 = vpack.c.bf16 %v711_v27, %v711_v27 }
 0x170   : >> { %v628_v31 = vpop.f32.mrf.mxu0  ;;  %v708_v32 = vpop.f32.mrf.mxu1 }
 0x171   : >> { %2995 = vmatmul.mubr.msk.bf16.vlgmr.msra.gmra.mxu0 %vm713_vm4, %v712_v30  ;;  %3001 = vmatmul.mubr.msk.bf16.vlgmr.msra.gmra.mxu1 %vm713_vm4, %v712_v30 }
 0x172   : >> { %v2983_v17 = vpop.f32.mrf.mxu0  ;;  %v2991_v33 = vpop.f32.mrf.mxu1 }
 0x231   : >> { %v751_v35 = vpop.f32.mrf.mxu0  ;;  %v791_v36 = vpop.f32.mrf.mxu1 }
 0x232   : >> { %v797_v37 = vmax.f32 %v751_v35, %v791_v36 }
 0x233   : >> { %v2996_v38 = vpop.f32.mrf.mxu0  ;;  %v3002_v39 = vpop.f32.mrf.mxu1 }
 0x234   : >> { %v804_v40 = vadd.f32 %v802_v34, %v797_v37 }
 0x235   : >> { %v754_v41 = vpop.f32.mrf.mxu0  ;;  %v794_v42 = vpop.f32.mrf.mxu1 }
 0x236   : >> { %v805_v43 = vmax.f32 %v804_v40, 0.0 }
 0x237   : >> { %v2997_v44 = vpop.f32.mrf.mxu0  ;;  %v3003_v45 = vpop.f32.mrf.mxu1 }
 0x238   : >> { %813 = vrot.lane.b32.xlu0 %v805_v43, %s3563_s30  ;;  %807 = vrot.lane.b32.xlu1 %v805_v43, %s3560_s24 }
 0x23c   : >> { %810 = vrot.lane.b32.xlu1 %v805_v43, %s3564_s14 }
 0x2aa   : >> { %v808_v46 = vpop.permute.xlu1 %807  ;;  %v814_v48 = vpop.permute.xlu0 %813 }
 0x2ad   : > { %528 = sbr.rel (!%p526_p5) target bundleno = 34 (0x22), region = 167 }
 0x2ae   : >> { %v811_v47 = vpop.permute.xlu1 %810 }
 0x2af   : >> { %v817_v49 = vsel %vm816_vm7, %v808_v46, %v811_v47 }
 0x2b0   : >> { %v819_v50 = vsel %vm818_vm8, %v817_v49, %v814_v48 }
 0x2b1   : >> { %2773 = vst.msk [vmem:[%s2630_s17 + $0x8] sm:$0xff] %vm503_vm1, %v819_v50 }
 0x2b8   : > { %v825_v51 = vld [vmem:[#allocation2 + $0x10] sm:$0xff]  ;;  %v828_v52 = vld [vmem:[#allocation2 + $0x38] sm:$0xff] }
 0x2b9   : > { %826 = vst.msk [vmem:[#allocation2] sm:$0xff] %vm503_vm1, %v825_v51  ;;  %830 = vst.msk [vmem:[#allocation2 + $0x48] sm:$0xff] %vm503_vm1, %v828_v52 }
 0x2ba LB: >> { %v3565_v53 = vmov 0.0   ;;  %s2866_s19 = sshll.u32 %s3542_s18, 4  ;;  %s3566_s21 = smov 127   ;;  %vm3568_vm2 = vmmov 0   ;;  %v3371_v24 = vld [vmem:[%s4390_s3] sm:$0xff]   ;;  %vm882_vm3 = vcmask 588800   ;;  %s3542_s18 = sphi %s3898_s18, %s836_s18  }
 0x2bb   : >> { %3004 = vmatprep.subr.bf16.mxu0 %v3565_v53  ;;  %3018 = vmatprep.subr.bf16.mxu1 %v3565_v53  ;;  %s839_s20 = scalar_lea.vmem [#allocation2], %s2866_s19  ;;  %s3567_s22 = smov 126   ;;  %v999_v25 = vsel %vm573_vm11, %v466_v11, 0  ;;  %v1043_v26 = vsel %vm573_vm11, %v467_v14, 0  ;;  %v1088_v27 = vld [vmem:[%s4391_s4] sm:$0xff]  ;;  %v1089_v28 = vld [vmem:[%s4391_s4 + $0x8] sm:$0xff] }
 0x2bc   : >> { %3014 = vmatprep.mubr.msk.bf16.mxu0 %vm3568_vm2, %v3565_v53  ;;  %3028 = vmatprep.mubr.msk.bf16.mxu1 %vm3568_vm2, %v3565_v53  ;;  %v3569_v29 = vmov 0   ;;  %vm994_vm5 = vcmask 64512   ;;  %s3570_s30 = smov 1   ;;  %s3571_s14 = smov 3   ;;  %vm1127_vm6 = vcmask 39936  }
 0x2bd   : >> { %3369 = vset.pattern.permute.xlu0 %v3569_v29  ;;  %3370 = vset.pattern.permute.xlu1 %v3569_v29  ;;  %s2647_s15 = scalar_lea.vmem [#allocation3], %s2866_s19  ;;  %s836_s18 = sadd.s32 1, %s3542_s18  }
 0x2be   : >> { %p833_p6 = scmp.ge.s32.totalorder %s836_s18, 4  }
 0x2bf   : > { %s3967_s17 = smov (%p833_p6), 0  }
 0x2c0   : >> { %v2781_v2 = vld [vmem:[%s839_s20 + $0x10] sm:$0xff]  ;;  %v2786_v4 = vld [vmem:[%s839_s20 + $0x18] sm:$0xff]  ;;  %v2778_v5 = vld [vmem:[%s839_s20 + $0x8] sm:$0xff] }
 0x2c1   : >> { %v3359_v7 = vpack.i.bf16 %v2786_v4, %v2781_v2  ;;  %857 = vrot.lane.b32.xlu1 %v2778_v5, %s3566_s21  ;;  %v840_v54 = vld [vmem:[%s839_s20] sm:$0xff] }
 0x2c3   : >> { %3360 = vrot.lane.b32.xlu0 %v3359_v7, %s3567_s22 }
 0x2c5   : >> { %860 = vrot.lane.b32.xlu1 %v2778_v5, %s3567_s22 }
 0x2c7   : >> { %3365 = vrot.lane.b32.xlu0 %v3359_v7, %s3566_s21 }
 0x2c9   : >> { %850 = vrot.lane.b32.xlu1 %v840_v54, %s3566_s21 }
 0x2cb   : >> { %853 = vrot.lane.b32.xlu0 %v840_v54, %s3567_s22 }
 0x2cd   : >> { %1097 = vperm.xlu1 %3370, %v1089_v28  }
 0x2cf   : >> { %1092 = vperm.xlu0 %3369, %v1088_v27  }
 0x333   : >> { %v858_v58 = vpop.permute.xlu1 %857 }
 0x334   : >> { %v942_v23 = vpack.c.bf16 %v858_v58, %v2778_v5 }
 0x335   : >> { %v3361_v55 = vpop.permute.xlu0 %3360 }
 0x336   : >> { %v3362_v56 = vunpack.i.l.bf16 %v3361_v55  ;;  %v3363_v57 = vunpack.i.h.bf16 %v3361_v55 }
 0x337   : >> { %v861_v9 = vpop.permute.xlu1 %860 }
 0x338   : >> { %v874_v59 = vpack.c.bf16 %v3362_v56, %v3362_v56  ;;  %v946_v60 = vpack.c.bf16 %v3363_v57, %v3363_v57  ;;  %v872_v18 = vpack.c.bf16 %v861_v9, %v858_v58  ;;  %v943_v21 = vpack.c.bf16 %v2781_v2, %v861_v9 }
 0x339   : >> { %v3366_v61 = vpop.permute.xlu0 %3365 }
 0x33a   : >> { %v3368_v62 = vunpack.i.h.bf16 %v3366_v61  ;;  %v3367_v63 = vunpack.i.l.bf16 %v3366_v61  ;;  %v888_v0 = vsel %vm573_vm11, %v874_v59, 0  ;;  %v948_v1 = vsel %vm573_vm11, %v946_v60, 0 }
 0x33b   : >> { %3005 = vmatpush3.bf16.msra.mxu0 %v888_v0  ;;  %3019 = vmatpush3.bf16.msra.mxu1 %v948_v1  ;;  %v851_v20 = vpop.permute.xlu1 %850 }
 0x33c   : >> { %v945_v3 = vpack.c.bf16 %v3368_v62, %v2786_v4  ;;  %v873_v6 = vpack.c.bf16 %v3367_v63, %v2781_v2  ;;  %3006 = vmatprep.subr.bf16.mxu0 %v3565_v53  ;;  %3020 = vmatprep.subr.bf16.mxu1 %v3565_v53  ;;  %v944_v15 = vpack.c.bf16 %v3362_v56, %v3367_v63 }
 0x33d   : >> { %v854_v10 = vpop.permute.xlu0 %853  ;;  %v870_v22 = vpack.c.bf16 %v851_v20, %v840_v54 }
 0x33e   : >> { %v871_v19 = vpack.c.bf16 %v2778_v5, %v854_v10 }
 0x33f   : >> { %3007 = vmatpush3.bf16.msra.mxu0 %v873_v6  ;;  %3021 = vmatpush3.bf16.msra.mxu1 %v945_v3 }
 0x340   : >> { %3008 = vmatprep.subr.bf16.mxu0 %v3565_v53  ;;  %3022 = vmatprep.subr.bf16.mxu1 %v3565_v53 }
 0x343   : >> { %3009 = vmatpush3.bf16.msra.mxu0 %v872_v18  ;;  %3023 = vmatpush3.bf16.msra.mxu1 %v944_v15 }
 0x344   : >> { %3010 = vmatprep.subr.bf16.mxu0 %v3565_v53  ;;  %3024 = vmatprep.subr.bf16.mxu1 %v3565_v53 }
 0x347   : >> { %3011 = vmatpush3.bf16.msra.mxu0 %v871_v19  ;;  %3025 = vmatpush3.bf16.msra.mxu1 %v943_v21 }
 0x348   : >> { %3012 = vmatprep.subr.bf16.mxu0 %v3565_v53  ;;  %3026 = vmatprep.subr.bf16.mxu1 %v3565_v53  ;;  %v1098_v47 = vpop.permute.xlu1 %1097 }
 0x34a   : >> { %v1093_v40 = vpop.permute.xlu0 %1092 }
 0x34b   : >> { %3013 = vmatpush3.bf16.msra.mxu0 %v870_v22  ;;  %3027 = vmatpush3.bf16.msra.mxu1 %v942_v23 }
 0x34c   : >> { %3032 = vmatprep.subr.bf16.mxu0 %v3565_v53  ;;  %3038 = vmatprep.subr.bf16.mxu1 %v3565_v53 }
 0x34e   : >> { %3015 = vmatmul.mubr.msk.bf16.vlgmr.msra.gmra.mxu0 %vm882_vm3, %v3371_v24  ;;  %3029 = vmatmul.mubr.msk.bf16.vlgmr.msra.gmra.mxu1 %vm882_vm3, %v3371_v24 }
 0x34f   : >> { %3034 = vmatprep.mubr.msk.bf16.mxu0 %vm3568_vm2, %v3565_v53  ;;  %3040 = vmatprep.mubr.msk.bf16.mxu1 %vm3568_vm2, %v3565_v53 }
 0x350   : >> { %3033 = vmatpush3.bf16.msra.mxu0 %v999_v25  ;;  %3039 = vmatpush3.bf16.msra.mxu1 %v1043_v26 }
 0x40e   : >> { %v924_v30 = vpop.f32.mrf.mxu0  ;;  %v984_v31 = vpop.f32.mrf.mxu1 }
 0x40f   : >> { %v991_v35 = vmax.f32 %v924_v30, %v984_v31 }
 0x410   : >> { %v3016_v32 = vpop.f32.mrf.mxu0  ;;  %v3030_v17 = vpop.f32.mrf.mxu1 }
 0x412   : >> { %v927_v33 = vpop.f32.mrf.mxu0  ;;  %v987_v34 = vpop.f32.mrf.mxu1 }
 0x413   : >> { %v992_v36 = vmax.f32 %v927_v33, %v987_v34 }
 0x414   : >> { %v3017_v37 = vpop.f32.mrf.mxu0  ;;  %v3031_v38 = vpop.f32.mrf.mxu1 }
 0x415   : >> { %v993_v39 = vpack.c.bf16 %v992_v36, %v991_v35 }
 0x417   : >> { %3035 = vmatmul.mubr.msk.bf16.vlgmr.msra.gmra.mxu0 %vm994_vm5, %v993_v39  ;;  %3041 = vmatmul.mubr.msk.bf16.vlgmr.msra.gmra.mxu1 %vm994_vm5, %v993_v39 }
 0x4d7   : >> { %v1035_v41 = vpop.f32.mrf.mxu0  ;;  %v1079_v42 = vpop.f32.mrf.mxu1 }
 0x4d8   : >> { %v1086_v43 = vmax.f32 %v1035_v41, %v1079_v42 }
 0x4d9   : >> { %v3036_v44 = vpop.f32.mrf.mxu0  ;;  %v3042_v45 = vpop.f32.mrf.mxu1 }
 0x4da   : >> { %v1100_v46 = vadd.f32 %v1093_v40, %v1086_v43 }
 0x4db   : >> { %v1038_v48 = vpop.f32.mrf.mxu0  ;;  %v1082_v49 = vpop.f32.mrf.mxu1 }
 0x4dc   : >> { %v1102_v50 = vmax.f32 %v1100_v46, 0.0  ;;  %v1087_v51 = vmax.f32 %v1038_v48, %v1082_v49 }
 0x4dd   : >> { %v3037_v52 = vpop.f32.mrf.mxu0  ;;  %v3043_v53 = vpop.f32.mrf.mxu1 }
 0x4de   : >> { %v1101_v2 = vadd.f32 %v1098_v47, %v1087_v51  ;;  %1106 = vrot.lane.b32.xlu1 %v1102_v50, %s3566_s21 }
 0x4e0   : >> { %v1103_v4 = vmax.f32 %v1101_v2, 0.0 }
 0x4e2   : >> { %1108 = vrot.lane.b32.xlu0 %v1103_v4, %s3566_s21  ;;  %1112 = vrot.lane.b32.xlu1 %v1102_v50, %s3570_s30 }
 0x4e6   : >> { %1114 = vrot.lane.b32.xlu0 %v1103_v4, %s3570_s30  ;;  %1118 = vrot.lane.b32.xlu1 %v1102_v50, %s3571_s14 }
 0x4ea   : >> { %1120 = vrot.lane.b32.xlu0 %v1103_v4, %s3571_s14 }
 0x550   : >> { %v1107_v5 = vpop.permute.xlu1 %1106 }
 0x554   : >> { %v1113_v7 = vpop.permute.xlu1 %1112  ;;  %v1109_v54 = vpop.permute.xlu0 %1108 }
 0x555   : >> { %v1125_v55 = vsel %vm816_vm7, %v1107_v5, %v1113_v7 }
 0x558   : >> { %v1119_v56 = vpop.permute.xlu1 %1118  ;;  %v1115_v57 = vpop.permute.xlu0 %1114 }
 0x559   : >> { %v1128_v58 = vsel %vm1127_vm6, %v1125_v55, %v1119_v56  ;;  %v1126_v59 = vsel %vm816_vm7, %v1109_v54, %v1115_v57 }
 0x55a   : >> { %2791 = vst.msk [vmem:[%s2647_s15 + $0x10] sm:$0xff] %vm478_vm0, %v1128_v58  ;;  %835 = sbr.rel (!%p833_p6) target bundleno = 698 (0x2ba), region = 178 }
 0x55c   : >> { %v1121_v60 = vpop.permute.xlu0 %1120 }
 0x55d   : >> { %v1129_v61 = vsel %vm1127_vm6, %v1126_v59, %v1121_v60 }
 0x55e   : >> { %2792 = vst.msk [vmem:[%s2647_s15 + $0x18] sm:$0xff] %vm478_vm0, %v1129_v61 }
 0x565   : > { %v1136_v62 = vld [vmem:[#allocation3 + $0x20] sm:$0xff]  ;;  %v1137_v63 = vld [vmem:[#allocation3 + $0x28] sm:$0xff]  ;;  %v1141_v0 = vld [vmem:[#allocation3 + $0x30] sm:$0xff] }
 0x566   : > { %1138 = vst.msk [vmem:[#allocation3] sm:$0xff] %vm478_vm0, %v1136_v62  ;;  %1139 = vst.msk [vmem:[#allocation3 + $0x8] sm:$0xff] %vm478_vm0, %v1137_v63  ;;  %v1142_v1 = vld [vmem:[#allocation3 + $0x38] sm:$0xff] }
 0x567   : > { %1144 = vst.msk [vmem:[#allocation3 + $0x50] sm:$0xff] %vm478_vm0, %v1141_v0  ;;  %1145 = vst.msk [vmem:[#allocation3 + $0x58] sm:$0xff] %vm478_vm0, %v1142_v1 }
 0x568 LB: >> { %v3572_v8 = vmov 0   ;;  %s2793_s18 = sshll.u32 %s3546_s17, 4  ;;  %s3573_s20 = smov 127   ;;  %v3406_v22 = vld [vmem:[%s4392_s5 + $0x4] ss:$8 sps:$4 sm:$0xff]   ;;  %v1224_v26 = vld [vmem:[%s4393_s6 + $0x18] sm:$0xff]  ;;  %s3546_s17 = sphi %s3967_s17, %s1151_s17  }
 0x569   : >> { %1270 = vmatprep.subr.bf16.mxu0 %v3572_v8  ;;  %3232 = vmatprep.subr.bf16.mxu1 %v3572_v8  ;;  %s1153_s19 = scalar_lea.vmem [#allocation3], %s2793_s18  ;;  %s3574_s21 = smov 126   ;;  %v3409_v23 = vld [vmem:[%s4392_s5 + $0x14] ss:$8 sps:$4 sm:$0xff]   ;;  %v1221_v24 = vld [vmem:[%s4393_s6] sm:$0xff]  ;;  %v1222_v25 = vld [vmem:[%s4393_s6 + $0x8] sm:$0xff] }
 0x56a   : >> { %3403 = vset.pattern.permute.xlu1 %v3572_v8  ;;  %3402 = vset.pattern.permute.xlu0 %v3572_v8  ;;  %v1223_v27 = vld [vmem:[%s4393_s6 + $0x10] sm:$0xff]  ;;  %v3404_v51 = vld [vmem:[%s4392_s5] ss:$8 sps:$4 sm:$0xff]   ;;  %s3575_s24 = smov 1   ;;  %s2806_s26 = sshll.u32 %s3546_s17, 5 }
 0x56b   : >> { %2804 = vmatprep.mubr.msk.bf16.mxu0 %vm713_vm4, %v3406_v22  ;;  %2805 = vmatprep.mubr.msk.bf16.mxu1 %vm713_vm4, %v3409_v23  ;;  %v3407_v52 = vld [vmem:[%s4392_s5 + $0x10] ss:$8 sps:$4 sm:$0xff]   ;;  %s2658_s27 = scalar_lea.vmem [#allocation4], %s2806_s26  ;;  %s1151_s17 = sadd.s32 1, %s3546_s17  }
 0x56c   : >> { %p1148_p7 = scmp.ge.s32.totalorder %s1151_s17, 4  }
 0x56d   : > { %s4039_s28 = smov (%p1148_p7), 0  }
 0x56e   : >> { %v2798_v11 = vld [vmem:[%s1153_s19 + $0x20] sm:$0xff]  ;;  %v2799_v13 = vld [vmem:[%s1153_s19 + $0x28] sm:$0xff]  ;;  %v2795_v14 = vld [vmem:[%s1153_s19 + $0x10] sm:$0xff] }
 0x56f   : >> { %v3372_v3 = vpack.i.bf16 %v2799_v13, %v2798_v11  ;;  %v2796_v6 = vld [vmem:[%s1153_s19 + $0x18] sm:$0xff]  ;;  %v1154_v9 = vld [vmem:[%s1153_s19] sm:$0xff]  ;;  %v1155_v10 = vld [vmem:[%s1153_s19 + $0x8] sm:$0xff]  ;;  %v1214_v15 = vpack.c.bf16 %v2799_v13, %v2798_v11 }
 0x570   : >> { %v3382_v18 = vpack.i.bf16 %v2796_v6, %v2795_v14  ;;  %v3387_v19 = vpack.i.bf16 %v1155_v10, %v1154_v9  ;;  %v1211_v20 = vpack.c.bf16 %v2796_v6, %v2795_v14  ;;  %v3977_v21 = vpack.c.bf16 %v1155_v10, %v1154_v9 }
 0x571   : >> { %3373 = vrot.lane.b32.xlu0 %v3372_v3, %s3573_s20 }
 0x572   : >> { %3383 = vrot.lane.b32.xlu1 %v3382_v18, %s3573_s20 }
 0x575   : >> { %3378 = vrot.lane.b32.xlu0 %v3382_v18, %s3574_s21 }
 0x576   : >> { %3388 = vrot.lane.b32.xlu1 %v3387_v19, %s3574_s21 }
 0x579   : >> { %3393 = vrot.lane.b32.xlu0 %v3387_v19, %s3573_s20 }
 0x57a   : >> { %3398 = vrot.lane.b32.xlu1 %v3372_v3, %s3574_s21 }
 0x57d   : >> { %1227 = vperm.xlu0 %3402, %v1221_v24  }
 0x57e   : >> { %1232 = vperm.xlu1 %3403, %v1222_v25  }
 0x581   : >> { %1242 = vperm.xlu0 %3402, %v1224_v26  }
 0x582   : >> { %1237 = vperm.xlu1 %3403, %v1223_v27  }
 0x5e3   : >> { %v3374_v28 = vpop.permute.xlu0 %3373 }
 0x5e4   : >> { %v3376_v29 = vunpack.i.h.bf16 %v3374_v28  ;;  %v3375_v30 = vunpack.i.l.bf16 %v3374_v28  ;;  %v3384_v34 = vpop.permute.xlu1 %3383 }
 0x5e5   : >> { %v3386_v36 = vunpack.i.h.bf16 %v3384_v34  ;;  %v3385_v37 = vunpack.i.l.bf16 %v3384_v34 }
 0x5e6   : >> { %v1215_v31 = vpack.c.bf16 %v3376_v29, %v3375_v30 }
 0x5e7   : >> { %v3379_v32 = vpop.permute.xlu0 %3378  ;;  %v1212_v38 = vpack.c.bf16 %v3386_v36, %v3385_v37 }
 0x5e8   : >> { %1271 = vmatpush1.bf16.msra.mxu0 %v1215_v31  ;;  %3241 = vmatpush1.bf16.msra.mxu1 %v1215_v31  ;;  %v3381_v17 = vunpack.i.h.bf16 %v3379_v32  ;;  %v3380_v33 = vunpack.i.l.bf16 %v3379_v32  ;;  %v3389_v39 = vpop.permute.xlu1 %3388 }
 0x5e9   : >> { %1272 = vmatprep.subr.bf16.mxu0 %v3572_v8  ;;  %3233 = vmatprep.subr.bf16.mxu1 %v3572_v8  ;;  %v3391_v40 = vunpack.i.h.bf16 %v3389_v39  ;;  %v3390_v41 = vunpack.i.l.bf16 %v3389_v39 }
 0x5ea   : >> { %v1213_v35 = vpack.c.bf16 %v3381_v17, %v3380_v33 }
 0x5eb   : >> { %v3394_v42 = vpop.permute.xlu0 %3393  ;;  %v1210_v43 = vpack.c.bf16 %v3391_v40, %v3390_v41 }
 0x5ec   : >> { %1273 = vmatpush1.bf16.msra.mxu0 %v1214_v15  ;;  %3242 = vmatpush1.bf16.msra.mxu1 %v1214_v15  ;;  %v3396_v44 = vunpack.i.h.bf16 %v3394_v42  ;;  %v3395_v45 = vunpack.i.l.bf16 %v3394_v42  ;;  %v3399_v47 = vpop.permute.xlu1 %3398 }
 0x5ed   : >> { %1274 = vmatprep.subr.bf16.mxu0 %v3572_v8  ;;  %3234 = vmatprep.subr.bf16.mxu1 %v3572_v8  ;;  %v3401_v48 = vunpack.i.h.bf16 %v3399_v47  ;;  %v3400_v49 = vunpack.i.l.bf16 %v3399_v47 }
 0x5ee   : >> { %v1209_v46 = vpack.c.bf16 %v3396_v44, %v3395_v45 }
 0x5ef   : >> { %v1216_v50 = vpack.c.bf16 %v3401_v48, %v3400_v49 }
 0x5f0   : >> { %1275 = vmatpush1.bf16.msra.mxu0 %v1213_v35  ;;  %3243 = vmatpush1.bf16.msra.mxu1 %v1213_v35 }
 0x5f1   : >> { %1276 = vmatprep.subr.bf16.mxu0 %v3572_v8  ;;  %3235 = vmatprep.subr.bf16.mxu1 %v3572_v8 }
 0x5f4   : >> { %1277 = vmatpush1.bf16.msra.mxu0 %v1212_v38  ;;  %3244 = vmatpush1.bf16.msra.mxu1 %v1212_v38 }
 0x5f5   : >> { %1278 = vmatprep.subr.bf16.mxu0 %v3572_v8  ;;  %3236 = vmatprep.subr.bf16.mxu1 %v3572_v8 }
 0x5f8   : >> { %1279 = vmatpush1.bf16.msra.mxu0 %v1211_v20  ;;  %3245 = vmatpush1.bf16.msra.mxu1 %v1211_v20  ;;  %v1228_v2 = vpop.permute.xlu0 %1227 }
 0x5f9   : >> { %1280 = vmatprep.subr.bf16.mxu0 %v3572_v8  ;;  %3237 = vmatprep.subr.bf16.mxu1 %v3572_v8  ;;  %v1233_v53 = vpop.permute.xlu1 %1232 }
 0x5fc   : >> { %1281 = vmatpush1.bf16.msra.mxu0 %v1210_v43  ;;  %3246 = vmatpush1.bf16.msra.mxu1 %v1210_v43  ;;  %v1243_v59 = vpop.permute.xlu0 %1242 }
 0x5fd   : >> { %1282 = vmatprep.subr.bf16.mxu0 %v3572_v8  ;;  %3238 = vmatprep.subr.bf16.mxu1 %v3572_v8  ;;  %v1238_v4 = vpop.permute.xlu1 %1237 }
 0x600   : >> { %1283 = vmatpush1.bf16.msra.mxu0 %v1209_v46  ;;  %3247 = vmatpush1.bf16.msra.mxu1 %v1209_v46 }
 0x601   : >> { %1284 = vmatprep.subr.bf16.mxu0 %v3572_v8  ;;  %3239 = vmatprep.subr.bf16.mxu1 %v3572_v8 }
 0x604   : >> { %1285 = vmatpush1.bf16.msra.mxu0 %v3977_v21  ;;  %3248 = vmatpush1.bf16.msra.mxu1 %v3977_v21 }
 0x605   : >> { %1300 = vmatprep.subr.bf16.mxu0 %v3572_v8  ;;  %3240 = vmatprep.subr.bf16.mxu1 %v3572_v8 }
 0x608   : >> { %1301 = vmatpush2.bf16.msra.mxu0 %v1216_v50  ;;  %3249 = vmatpush2.bf16.msra.mxu1 %v1216_v50 }
 0x60b   : >> { %1303 = vmatmul.mubr.bf16.vlgmr.msra.gmra.mxu0 %v3404_v51  ;;  %1311 = vmatmul.mubr.bf16.vlgmr.msra.gmra.mxu1 %v3407_v52 }
 0x6cb   : >> { %v1304_v5 = vpop.f32.mrf.mxu0  ;;  %v1312_v7 = vpop.f32.mrf.mxu1 }
 0x6cc   : >> { %v1305_v54 = vadd.f32 %v1304_v5, %v1228_v2  ;;  %v1313_v55 = vadd.f32 %v1312_v7, %v1238_v4 }
 0x6cd   : >> { %v1306_v56 = vpop.f32.mrf.mxu0  ;;  %v1314_v57 = vpop.f32.mrf.mxu1 }
 0x6ce   : >> { %v1319_v58 = vmax.f32 %v1305_v54, 0.0  ;;  %v1321_v62 = vmax.f32 %v1313_v55, 0.0 }
 0x6cf   : >> { %v1307_v60 = vpop.f32.mrf.mxu0  ;;  %v1315_v61 = vpop.f32.mrf.mxu1 }
 0x6d0   : >> { %v1308_v63 = vadd.f32 %v1307_v60, %v1233_v53  ;;  %1327 = vrot.lane.b32.xlu1 %v1319_v58, %s3575_s24  ;;  %v1316_v11 = vadd.f32 %v1315_v61, %v1243_v59 }
 0x6d1   : >> { %v1309_v0 = vpop.f32.mrf.mxu0  ;;  %v1317_v1 = vpop.f32.mrf.mxu1 }
 0x6d2   : >> { %v1320_v8 = vmax.f32 %v1308_v63, 0.0  ;;  %v1322_v13 = vmax.f32 %v1316_v11, 0.0 }
 0x6d4   : >> { %1329 = vrot.lane.b32.xlu0 %v1320_v8, %s3575_s24  ;;  %1331 = vrot.lane.b32.xlu1 %v1321_v62, %s3575_s24 }
 0x6d8   : >> { %1333 = vrot.lane.b32.xlu0 %v1322_v13, %s3575_s24 }
 0x742   : >> { %v1328_v14 = vpop.permute.xlu1 %1327 }
 0x743   : >> { %v1340_v3 = vsel %vm816_vm7, 0.0, %v1328_v14 }
 0x744   : >> { %v1345_v6 = vsel %vm1127_vm6, %v1340_v3, 0.0 }
 0x745   : >> { %2807 = vst.msk [vmem:[%s2658_s27 + $0x20] sm:$0xff] %vm478_vm0, %v1345_v6 }
 0x746   : >> { %v1330_v9 = vpop.permute.xlu0 %1329  ;;  %v1332_v10 = vpop.permute.xlu1 %1331 }
 0x747   : >> { %v1341_v15 = vsel %vm816_vm7, 0.0, %v1330_v9  ;;  %v1342_v18 = vsel %vm816_vm7, 0.0, %v1332_v10 }
 0x748   : >> { %v1346_v19 = vsel %vm1127_vm6, %v1341_v15, 0.0  ;;  %v1347_v20 = vsel %vm1127_vm6, %v1342_v18, 0.0 }
 0x749   : >> { %2808 = vst.msk [vmem:[%s2658_s27 + $0x28] sm:$0xff] %vm478_vm0, %v1346_v19  ;;  %2809 = vst.msk [vmem:[%s2658_s27 + $0x30] sm:$0xff] %vm478_vm0, %v1347_v20  ;;  %1150 = sbr.rel (!%p1148_p7) target bundleno = 1384 (0x568), region = 189 }
 0x74a   : >> { %v1334_v21 = vpop.permute.xlu0 %1333 }
 0x74b   : >> { %v1343_v22 = vsel %vm816_vm7, 0.0, %v1334_v21 }
 0x74c   : >> { %v1348_v23 = vsel %vm1127_vm6, %v1343_v22, 0.0 }
 0x74d   : >> { %2810 = vst.msk [vmem:[%s2658_s27 + $0x38] sm:$0xff] %vm478_vm0, %v1348_v23 }
 0x74e LB: >> { %s2811_s29 = sshll.u32 %s3550_s28, 5  ;;  %s3576_s17 = smov 1   ;;  %v3578_v39 = vmov 0.0   ;;  %vm3579_vm0 = vmmov 0   ;;  %vm1603_vm9 = vcmask 31744   ;;  %s3550_s28 = sphi %s4039_s28, %s1360_s28  }
 0x74f   : >> { %s4047_s30 = scalar_lea.vmem [#allocation4], %s2811_s29  ;;  %s3577_s14 = smov 127   ;;  %3044 = vmatprep.subr.bf16.mxu0 %v3578_v39  ;;  %3064 = vmatprep.subr.bf16.mxu1 %v3578_v39 }
 0x750   : >> { %3060 = vmatprep.mubr.msk.bf16.mxu0 %vm3579_vm0, %v3578_v39  ;;  %3080 = vmatprep.mubr.msk.bf16.mxu1 %vm3579_vm0, %v3578_v39  ;;  %s2670_s15 = scalar_lea.vmem [#allocation5], %s2811_s29  ;;  %s1360_s28 = sadd.s32 1, %s3550_s28  }
 0x751   : >> { %p1357_p8 = scmp.ge.s32.totalorder %s1360_s28, 4  }
 0x752   : > { %s4257_s29 = smov (%p1357_p8), 0  }
 0x754   : >> { %v1365_v24 = vld [vmem:[%s4047_s30 + $0x10] sm:$0xff]  ;;  %v1366_v25 = vld [vmem:[%s4047_s30 + $0x18] sm:$0xff]  ;;  %v1363_v26 = vld [vmem:[%s4047_s30] sm:$0xff] }
 0x755   : >> { %v3410_v27 = vpack.i.bf16 %v1366_v25, %v1365_v24  ;;  %v1364_v28 = vld [vmem:[%s4047_s30 + $0x8] sm:$0xff]  ;;  %v1428_v29 = vpack.c.bf16 %v1366_v25, %v1365_v24  ;;  %v4056_v32 = vld [vmem:[%s4047_s30 + $0x30] sm:$0xff]  ;;  %v4059_v17 = vld [vmem:[%s4047_s30 + $0x38] sm:$0xff] }
 0x756   : >> { %v3420_v30 = vpack.i.bf16 %v1364_v28, %v1363_v26  ;;  %v1427_v31 = vpack.c.bf16 %v1364_v28, %v1363_v26  ;;  %v3430_v33 = vpack.i.bf16 %v4059_v17, %v4056_v32  ;;  %v4066_v34 = vld [vmem:[%s4047_s30 + $0x20] sm:$0xff]  ;;  %v2814_v35 = vld [vmem:[%s4047_s30 + $0x28] sm:$0xff]  ;;  %v1424_v36 = vpack.c.bf16 %v4059_v17, %v4056_v32  ;;  %v4089_v13 = vld [vmem:[%s4047_s30 + $0x50] sm:$0xff] }
 0x757   : >> { %3411 = vrot.lane.b32.xlu0 %v3410_v27, %s3576_s17  ;;  %v3440_v37 = vpack.i.bf16 %v2814_v35, %v4066_v34  ;;  %v1423_v38 = vpack.c.bf16 %v2814_v35, %v4066_v34  ;;  %v4092_v14 = vld [vmem:[%s4047_s30 + $0x58] sm:$0xff]  ;;  %v4103_v6 = vld [vmem:[%s4047_s30 + $0x40] sm:$0xff]  ;;  %v4106_v9 = vld [vmem:[%s4047_s30 + $0x48] sm:$0xff] }
 0x758   : >> { %3421 = vrot.lane.b32.xlu1 %v3420_v30, %s3576_s17  ;;  %v3450_v3 = vpack.i.bf16 %v4092_v14, %v4089_v13  ;;  %v3460_v10 = vpack.i.bf16 %v4106_v9, %v4103_v6  ;;  %v1729_v15 = vpack.c.bf16 %v4106_v9, %v4103_v6 }
 0x75b   : >> { %3416 = vrot.lane.b32.xlu0 %v3410_v27, %s3577_s14 }
 0x75c   : >> { %3426 = vrot.lane.b32.xlu1 %v3420_v30, %s3577_s14 }
 0x75f   : >> { %3431 = vrot.lane.b32.xlu0 %v3430_v33, %s3576_s17 }
 0x760   : >> { %3436 = vrot.lane.b32.xlu1 %v3430_v33, %s3577_s14  ;;  %v3472_v33 = vld [vmem:[%s4394_s7] sm:$0xff]  }
 0x763   : >> { %3441 = vrot.lane.b32.xlu0 %v3440_v37, %s3576_s17 }
 0x764   : >> { %3446 = vrot.lane.b32.xlu1 %v3440_v37, %s3577_s14 }
 0x7c9   : >> { %v3412_v40 = vpop.permute.xlu0 %3411 }
 0x7ca   : >> { %v3414_v41 = vunpack.i.h.bf16 %v3412_v40  ;;  %v3413_v42 = vunpack.i.l.bf16 %v3412_v40  ;;  %v3422_v43 = vpop.permute.xlu1 %3421 }
 0x7cb   : >> { %v3424_v44 = vunpack.i.h.bf16 %v3422_v43  ;;  %v3423_v45 = vunpack.i.l.bf16 %v3422_v43  ;;  %v3473_v43 = vld [vmem:[%s4394_s7 + $0x8] sm:$0xff]  }
 0x7cc   : >> { %v1430_v46 = vpack.c.bf16 %v3414_v41, %v3413_v42 }
 0x7cd   : >> { %v3417_v47 = vpop.permute.xlu0 %3416  ;;  %v1429_v50 = vpack.c.bf16 %v3424_v44, %v3423_v45 }
 0x7ce   : >> { %v3419_v48 = vunpack.i.h.bf16 %v3417_v47  ;;  %v3418_v49 = vunpack.i.l.bf16 %v3417_v47  ;;  %1459 = vrot.lane.b32.xlu0 %v1430_v46, %s3577_s14  ;;  %v3427_v51 = vpop.permute.xlu1 %3426  ;;  %v1730_v47 = vpack.c.bf16 %v4092_v14, %v4089_v13 }
 0x7cf   : >> { %v3429_v52 = vunpack.i.h.bf16 %v3427_v51  ;;  %v3428_v53 = vunpack.i.l.bf16 %v3427_v51  ;;  %v1389_v51 = vld [vmem:[%s4395_s8] sm:$0xff] }
 0x7d0   : >> { %v1537_v2 = vpack.c.bf16 %v3419_v48, %v3418_v49  ;;  %v4176_v49 = vsel %vm571_vm10, %v3811_v16, 0 }
 0x7d1   : >> { %v3432_v4 = vpop.permute.xlu0 %3431  ;;  %v1536_v5 = vpack.c.bf16 %v3429_v52, %v3428_v53  ;;  %v1390_v52 = vld [vmem:[%s4395_s8 + $0x8] sm:$0xff]  ;;  %v3580_v53 = vmov 0  }
 0x7d2   : >> { %1554 = vrot.lane.b32.xlu1 %v1537_v2, %s3577_s14  ;;  %1457 = vrot.lane.b32.xlu0 %v1429_v50, %s3577_s14  ;;  %v3434_v7 = vunpack.i.h.bf16 %v3432_v4  ;;  %v3433_v54 = vunpack.i.l.bf16 %v3432_v4  ;;  %v3437_v55 = vpop.permute.xlu1 %3436  ;;  %v4180_v50 = vsel %vm571_vm10, %v3800_v12, 0 }
 0x7d3   : >> { %v3439_v57 = vunpack.i.h.bf16 %v3437_v55  ;;  %v3438_v61 = vunpack.i.l.bf16 %v3437_v55  ;;  %3470 = vset.pattern.permute.xlu0 %v3580_v53  ;;  %3471 = vset.pattern.permute.xlu1 %v3580_v53 }
 0x7d4   : >> { %v1426_v58 = vpack.c.bf16 %v3434_v7, %v3433_v54 }
 0x7d5   : >> { %v3442_v56 = vpop.permute.xlu0 %3441  ;;  %v1535_v0 = vpack.c.bf16 %v3439_v57, %v3438_v61 }
 0x7d6   : >> { %1552 = vrot.lane.b32.xlu1 %v1536_v5, %s3577_s14  ;;  %1455 = vrot.lane.b32.xlu0 %v1428_v29, %s3577_s14  ;;  %v3444_v59 = vunpack.i.h.bf16 %v3442_v56  ;;  %v3443_v60 = vunpack.i.l.bf16 %v3442_v56  ;;  %v3447_v62 = vpop.permute.xlu1 %3446 }
 0x7d7   : >> { %v3449_v1 = vunpack.i.h.bf16 %v3447_v62  ;;  %v3448_v8 = vunpack.i.l.bf16 %v3447_v62 }
 0x7d8   : >> { %v1425_v63 = vpack.c.bf16 %v3444_v59, %v3443_v60 }
 0x7d9   : >> { %v1534_v11 = vpack.c.bf16 %v3449_v1, %v3448_v8  ;;  %v3474_v8 = vld [vmem:[%s4394_s7 + $0x18] sm:$0xff]  }
 0x7da   : >> { %1453 = vrot.lane.b32.xlu1 %v1427_v31, %s3577_s14  ;;  %1451 = vrot.lane.b32.xlu0 %v1426_v58, %s3577_s14 }
 0x7de   : >> { %1449 = vrot.lane.b32.xlu0 %v1425_v63, %s3577_s14  ;;  %1550 = vrot.lane.b32.xlu1 %v1535_v0, %s3577_s14 }
 0x7e2   : >> { %1447 = vrot.lane.b32.xlu0 %v1424_v36, %s3577_s14  ;;  %1548 = vrot.lane.b32.xlu1 %v1534_v11, %s3577_s14  ;;  %v3475_v11 = vld [vmem:[%s4394_s7 + $0x10] sm:$0xff]  }
 0x7e6   : >> { %1445 = vrot.lane.b32.xlu1 %v1423_v38, %s3577_s14  ;;  %3451 = vrot.lane.b32.xlu0 %v3450_v3, %s3576_s17 }
 0x7ea   : >> { %3456 = vrot.lane.b32.xlu1 %v3450_v3, %s3577_s14  ;;  %3461 = vrot.lane.b32.xlu0 %v3460_v10, %s3576_s17 }
 0x7ee   : >> { %3466 = vrot.lane.b32.xlu1 %v3460_v10, %s3577_s14 }
 0x840   : >> { %v1460_v18 = vpop.permute.xlu0 %1459 }
 0x841   : >> { %3045 = vmatpush3.bf16.msra.mxu0 %v1460_v18 }
 0x842   : >> { %3046 = vmatprep.subr.bf16.mxu0 %v3578_v39 }
 0x844   : >> { %v1555_v19 = vpop.permute.xlu1 %1554  ;;  %v1458_v20 = vpop.permute.xlu0 %1457 }
 0x845   : >> { %3047 = vmatpush3.bf16.msra.mxu0 %v1458_v20  ;;  %3065 = vmatpush3.bf16.msra.mxu1 %v1555_v19 }
 0x846   : >> { %3066 = vmatprep.subr.bf16.mxu1 %v3578_v39  ;;  %3048 = vmatprep.subr.bf16.mxu0 %v3578_v39 }
 0x848   : >> { %v1553_v21 = vpop.permute.xlu1 %1552  ;;  %v1456_v22 = vpop.permute.xlu0 %1455 }
 0x849   : >> { %3049 = vmatpush3.bf16.msra.mxu0 %v1456_v22  ;;  %3067 = vmatpush3.bf16.msra.mxu1 %v1553_v21 }
 0x84a   : >> { %3050 = vmatprep.subr.bf16.mxu0 %v3578_v39  ;;  %3068 = vmatprep.subr.bf16.mxu1 %v3578_v39 }
 0x84c   : >> { %v1454_v23 = vpop.permute.xlu1 %1453  ;;  %v4122_v24 = vpop.permute.xlu0 %1451 }
 0x84d   : >> { %3051 = vmatpush3.bf16.msra.mxu0 %v1454_v23  ;;  %3069 = vmatpush3.bf16.msra.mxu1 %v1456_v22 }
 0x84e   : >> { %3070 = vmatprep.subr.bf16.mxu1 %v3578_v39  ;;  %3052 = vmatprep.subr.bf16.mxu0 %v3578_v39 }
 0x850   : >> { %v4126_v25 = vpop.permute.xlu0 %1449  ;;  %v4128_v26 = vpop.permute.xlu1 %1550 }
 0x851   : >> { %3053 = vmatpush3.bf16.msra.mxu0 %v4122_v24  ;;  %3071 = vmatpush3.bf16.msra.mxu1 %v1454_v23 }
 0x852   : >> { %3054 = vmatprep.subr.bf16.mxu0 %v3578_v39  ;;  %3072 = vmatprep.subr.bf16.mxu1 %v3578_v39 }
 0x854   : >> { %v4133_v27 = vpop.permute.xlu0 %1447  ;;  %v4135_v28 = vpop.permute.xlu1 %1548 }
 0x855   : >> { %3055 = vmatpush3.bf16.msra.mxu0 %v4126_v25  ;;  %3073 = vmatpush3.bf16.msra.mxu1 %v4128_v26 }
 0x856   : >> { %3056 = vmatprep.subr.bf16.mxu0 %v3578_v39  ;;  %3074 = vmatprep.subr.bf16.mxu1 %v3578_v39 }
 0x858   : >> { %v4141_v29 = vpop.permute.xlu1 %1445  ;;  %v3452_v30 = vpop.permute.xlu0 %3451 }
 0x859   : >> { %3057 = vmatpush3.bf16.msra.mxu0 %v4133_v27  ;;  %3075 = vmatpush3.bf16.msra.mxu1 %v4135_v28  ;;  %v3454_v31 = vunpack.i.h.bf16 %v3452_v30  ;;  %v3453_v32 = vunpack.i.l.bf16 %v3452_v30 }
 0x85a   : >> { %3058 = vmatprep.subr.bf16.mxu0 %v3578_v39  ;;  %3076 = vmatprep.subr.bf16.mxu1 %v3578_v39 }
 0x85b   : >> { %v1732_v17 = vpack.c.bf16 %v3454_v31, %v3453_v32 }
 0x85c   : >> { %v3457_v34 = vpop.permute.xlu1 %3456  ;;  %v3462_v35 = vpop.permute.xlu0 %3461 }
 0x85d   : >> { %3059 = vmatpush3.bf16.msra.mxu0 %v4141_v29  ;;  %3077 = vmatpush3.bf16.msra.mxu1 %v4133_v27  ;;  %v3459_v36 = vunpack.i.h.bf16 %v3457_v34  ;;  %v3458_v37 = vunpack.i.l.bf16 %v3457_v34  ;;  %v3464_v38 = vunpack.i.h.bf16 %v3462_v35  ;;  %v3463_v40 = vunpack.i.l.bf16 %v3462_v35 }
 0x85e   : >> { %3078 = vmatprep.subr.bf16.mxu1 %v3578_v39  ;;  %1749 = vrot.lane.b32.xlu0 %v1732_v17, %s3577_s14 }
 0x85f   : >> { %v1809_v41 = vpack.c.bf16 %v3459_v36, %v3458_v37  ;;  %v1731_v42 = vpack.c.bf16 %v3464_v38, %v3463_v40  ;;  %3084 = vmatprep.subr.bf16.mxu0 %v3578_v39 }
 0x860   : >> { %3061 = vmatmul.mubr.bf16.vlgmr.msra.gmra.mxu0 %v3472_v33  ;;  %v3467_v44 = vpop.permute.xlu1 %3466 }
 0x861   : >> { %3079 = vmatpush3.bf16.msra.mxu1 %v4141_v29  ;;  %v3469_v45 = vunpack.i.h.bf16 %v3467_v44  ;;  %v3468_v46 = vunpack.i.l.bf16 %v3467_v44  ;;  %1820 = vrot.lane.b32.xlu1 %v1809_v41, %s3577_s14 }
 0x862   : >> { %1747 = vrot.lane.b32.xlu0 %v1731_v42, %s3577_s14  ;;  %3090 = vmatprep.subr.bf16.mxu1 %v3578_v39 }
 0x863   : >> { %v1808_v48 = vpack.c.bf16 %v3469_v45, %v3468_v46  ;;  %3086 = vmatprep.mubr.msk.bf16.mxu0 %vm3579_vm0, %v3578_v39  ;;  %3085 = vmatpush3.bf16.msra.mxu0 %v4176_v49 }
 0x864   : >> { %3081 = vmatmul.mubr.bf16.vlgmr.msra.gmra.mxu1 %v3473_v43  ;;  %3096 = vmatprep.subr.bf16.mxu0 %v3578_v39 }
 0x865   : >> { %1818 = vrot.lane.b32.xlu1 %v1808_v48, %s3577_s14  ;;  %3092 = vmatprep.mubr.msk.bf16.mxu1 %vm3579_vm0, %v3578_v39 }
 0x866   : >> { %1745 = vrot.lane.b32.xlu0 %v1730_v47, %s3577_s14  ;;  %3091 = vmatpush3.bf16.msra.mxu1 %v4180_v50 }
 0x867   : >> { %3116 = vmatprep.subr.bf16.mxu1 %v3578_v39 }
 0x869   : >> { %1743 = vrot.lane.b32.xlu1 %v1729_v15, %s3577_s14 }
 0x86a   : >> { %1701 = vperm.xlu0 %3470, %v1389_v51  }
 0x86d   : >> { %1706 = vperm.xlu1 %3471, %v1390_v52  }
 0x8d0   : >> { %v1750_v4 = vpop.permute.xlu0 %1749 }
 0x8d3   : >> { %v1821_v7 = vpop.permute.xlu1 %1820 }
 0x8d4   : >> { %v1748_v59 = vpop.permute.xlu0 %1747 }
 0x8d7   : >> { %v1819_v62 = vpop.permute.xlu1 %1818 }
 0x8d8   : >> { %v1746_v0 = vpop.permute.xlu0 %1745 }
 0x8db   : >> { %v1744_v1 = vpop.permute.xlu1 %1743 }
 0x8e5   : >> { %v1702_v3 = vpop.permute.xlu0 %1701 }
 0x8e8   : >> { %v1707_v21 = vpop.permute.xlu1 %1706 }
 0x920   : >> { %v1503_v2 = vpop.f32.mrf.mxu0 }
 0x922   : >> { %v3062_v5 = vpop.f32.mrf.mxu0 }
 0x924   : >> { %v1506_v54 = vpop.f32.mrf.mxu0  ;;  %v1594_v55 = vpop.f32.mrf.mxu1 }
 0x925   : >> { %v1601_v56 = vpack.c.bf16 %v1506_v54, %v1503_v2 }
 0x926   : >> { %v3063_v57 = vpop.f32.mrf.mxu0  ;;  %v3082_v58 = vpop.f32.mrf.mxu1 }
 0x927   : >> { %3093 = vmatmul.mubr.msk.bf16.vlgmr.msra.gmra.mxu1 %vm1603_vm9, %v1601_v56 }
 0x928   : >> { %3117 = vmatpush3.bf16.msra.mxu1 %v1821_v7  ;;  %v1597_v60 = vpop.f32.mrf.mxu1  ;;  %3132 = vmatprep.mubr.msk.bf16.mxu1 %vm3579_vm0, %v3578_v39 }
 0x929   : >> { %v1602_v61 = vpack.c.bf16 %v1597_v60, %v1594_v55  ;;  %3118 = vmatprep.subr.bf16.mxu1 %v3578_v39 }
 0x92a   : >> { %v3083_v63 = vpop.f32.mrf.mxu1 }
 0x92b   : >> { %3087 = vmatmul.mubr.msk.bf16.vlgmr.msra.gmra.mxu0 %vm1603_vm9, %v1602_v61 }
 0x92c   : >> { %3097 = vmatpush3.bf16.msra.mxu0 %v1750_v4  ;;  %3119 = vmatpush3.bf16.msra.mxu1 %v1819_v62 }
 0x92d   : >> { %3098 = vmatprep.subr.bf16.mxu0 %v3578_v39  ;;  %3120 = vmatprep.subr.bf16.mxu1 %v3578_v39 }
 0x92e   : >> { %3112 = vmatprep.mubr.msk.bf16.mxu0 %vm3579_vm0, %v3578_v39 }
 0x930   : >> { %3099 = vmatpush3.bf16.msra.mxu0 %v1748_v59  ;;  %3121 = vmatpush3.bf16.msra.mxu1 %v1746_v0 }
 0x931   : >> { %3100 = vmatprep.subr.bf16.mxu0 %v3578_v39  ;;  %3122 = vmatprep.subr.bf16.mxu1 %v3578_v39 }
 0x934   : >> { %3101 = vmatpush3.bf16.msra.mxu0 %v1746_v0  ;;  %3123 = vmatpush3.bf16.msra.mxu1 %v1744_v1 }
 0x935   : >> { %3102 = vmatprep.subr.bf16.mxu0 %v3578_v39  ;;  %3124 = vmatprep.subr.bf16.mxu1 %v3578_v39 }
 0x938   : >> { %3103 = vmatpush3.bf16.msra.mxu0 %v1744_v1  ;;  %3125 = vmatpush3.bf16.msra.mxu1 %v4128_v26 }
 0x939   : >> { %3104 = vmatprep.subr.bf16.mxu0 %v3578_v39  ;;  %3126 = vmatprep.subr.bf16.mxu1 %v3578_v39 }
 0x93c   : >> { %3105 = vmatpush3.bf16.msra.mxu0 %v4122_v24  ;;  %3127 = vmatpush3.bf16.msra.mxu1 %v4135_v28 }
 0x93d   : >> { %3106 = vmatprep.subr.bf16.mxu0 %v3578_v39  ;;  %3128 = vmatprep.subr.bf16.mxu1 %v3578_v39 }
 0x940   : >> { %3107 = vmatpush3.bf16.msra.mxu0 %v4126_v25  ;;  %3129 = vmatpush3.bf16.msra.mxu1 %v4133_v27 }
 0x941   : >> { %3108 = vmatprep.subr.bf16.mxu0 %v3578_v39  ;;  %3130 = vmatprep.subr.bf16.mxu1 %v3578_v39 }
 0x944   : >> { %3109 = vmatpush3.bf16.msra.mxu0 %v4133_v27  ;;  %3131 = vmatpush3.bf16.msra.mxu1 %v4141_v29 }
 0x945   : >> { %3110 = vmatprep.subr.bf16.mxu0 %v3578_v39  ;;  %3142 = vmatprep.subr.bf16.mxu1 %v3578_v39 }
 0x947   : >> { %3133 = vmatmul.mubr.bf16.vlgmr.msra.gmra.mxu1 %v3474_v8 }
 0x948   : >> { %3111 = vmatpush3.bf16.msra.mxu0 %v4141_v29  ;;  %3143 = vmatpush3.bf16.msra.mxu1 %v4180_v50 }
 0x949   : >> { %3136 = vmatprep.subr.bf16.mxu0 %v3578_v39  ;;  %3144 = vmatprep.mubr.msk.bf16.mxu1 %vm3579_vm0, %v3578_v39 }
 0x94b   : >> { %3113 = vmatmul.mubr.bf16.vlgmr.msra.gmra.mxu0 %v3475_v11 }
 0x94c   : >> { %3137 = vmatpush3.bf16.msra.mxu0 %v4176_v49  ;;  %3138 = vmatprep.mubr.msk.bf16.mxu0 %vm3579_vm0, %v3578_v39 }
 0x9e7   : >> { %v1692_v13 = vpop.f32.mrf.mxu1 }
 0x9e9   : >> { %v3094_v14 = vpop.f32.mrf.mxu1 }
 0x9eb   : >> { %v1645_v6 = vpop.f32.mrf.mxu0  ;;  %v1695_v9 = vpop.f32.mrf.mxu1 }
 0x9ec   : >> { %v1693_v10 = vadd.f32 %v1692_v13, %v1645_v6 }
 0x9ed   : >> { %v3088_v15 = vpop.f32.mrf.mxu0  ;;  %v3095_v18 = vpop.f32.mrf.mxu1 }
 0x9ee   : >> { %v1709_v19 = vadd.f32 %v1702_v3, %v1693_v10 }
 0x9ef   : >> { %v1648_v20 = vpop.f32.mrf.mxu0 }
 0x9f0   : >> { %v1711_v22 = vmax.f32 %v1709_v19, 0.0  ;;  %v1696_v23 = vadd.f32 %v1695_v9, %v1648_v20 }
 0x9f1   : >> { %v3089_v24 = vpop.f32.mrf.mxu0 }
 0x9f2   : >> { %v1710_v25 = vadd.f32 %v1707_v21, %v1696_v23  ;;  %1961 = vrot.lane.b32.xlu1 %v1711_v22, %s3576_s17 }
 0x9f4   : >> { %v1712_v26 = vmax.f32 %v1710_v25, 0.0 }
 0x9f6   : >> { %1963 = vrot.lane.b32.xlu0 %v1712_v26, %s3576_s17 }
 0xa07   : >> { %v1858_v39 = vpop.f32.mrf.mxu1 }
 0xa09   : >> { %v3134_v27 = vpop.f32.mrf.mxu1 }
 0xa0b   : >> { %v1789_v28 = vpop.f32.mrf.mxu0  ;;  %v1861_v29 = vpop.f32.mrf.mxu1 }
 0xa0c   : >> { %v1866_v30 = vpack.c.bf16 %v1861_v29, %v1858_v39 }
 0xa0d   : >> { %v3114_v31 = vpop.f32.mrf.mxu0  ;;  %v3135_v32 = vpop.f32.mrf.mxu1 }
 0xa0e   : >> { %3139 = vmatmul.mubr.msk.bf16.vlgmr.msra.gmra.mxu0 %vm1603_vm9, %v1866_v30 }
 0xa0f   : >> { %v1792_v17 = vpop.f32.mrf.mxu0 }
 0xa10   : >> { %v1865_v33 = vpack.c.bf16 %v1792_v17, %v1789_v28 }
 0xa11   : >> { %v3115_v34 = vpop.f32.mrf.mxu0 }
 0xa12   : >> { %3145 = vmatmul.mubr.msk.bf16.vlgmr.msra.gmra.mxu1 %vm1603_vm9, %v1865_v33 }
 0xa64   : >> { %v1962_v35 = vpop.permute.xlu1 %1961 }
 0xa65   : >> { %v1968_v36 = vsel %vm816_vm7, 0.0, %v1962_v35 }
 0xa66   : >> { %v1971_v37 = vsel %vm818_vm8, %v1968_v36, 0.0 }
 0xa67   : >> { %2832 = vst.msk [vmem:[%s2670_s15 + $0x10] sm:$0xff] %vm503_vm1, %v1971_v37 }
 0xa68   : >> { %v1964_v38 = vpop.permute.xlu0 %1963 }
 0xa69   : >> { %v1969_v40 = vsel %vm816_vm7, 0.0, %v1964_v38 }
 0xa6a   : >> { %v1972_v41 = vsel %vm818_vm8, %v1969_v40, 0.0 }
 0xa6b   : >> { %2833 = vst.msk [vmem:[%s2670_s15 + $0x18] sm:$0xff] %vm503_vm1, %v1972_v41 }
 0xace   : >> { %v1904_v42 = vpop.f32.mrf.mxu0 }
 0xad0   : >> { %v3140_v43 = vpop.f32.mrf.mxu0 }
 0xad2   : >> { %v1907_v44 = vpop.f32.mrf.mxu0  ;;  %v1948_v45 = vpop.f32.mrf.mxu1 }
 0xad3   : >> { %v1949_v46 = vadd.f32 %v1948_v45, %v1904_v42 }
 0xad4   : >> { %v3141_v47 = vpop.f32.mrf.mxu0  ;;  %v3146_v48 = vpop.f32.mrf.mxu1 }
 0xad5   : >> { %v1955_v49 = vadd.f32 %v1949_v46, %v1702_v3 }
 0xad6   : >> { %v1951_v50 = vpop.f32.mrf.mxu1 }
 0xad7   : >> { %v1957_v51 = vmax.f32 %v1955_v49, 0.0  ;;  %v1952_v52 = vadd.f32 %v1951_v50, %v1907_v44 }
 0xad8   : >> { %v3147_v53 = vpop.f32.mrf.mxu1 }
 0xad9   : >> { %v1956_v2 = vadd.f32 %v1952_v52, %v1707_v21  ;;  %1981 = vrot.lane.b32.xlu1 %v1957_v51, %s3576_s17 }
 0xadb   : >> { %v1958_v4 = vmax.f32 %v1956_v2, 0.0 }
 0xadd   : >> { %1983 = vrot.lane.b32.xlu0 %v1958_v4, %s3576_s17 }
 0xb4b   : >> { %v1982_v5 = vpop.permute.xlu1 %1981 }
 0xb4c   : >> { %v1987_v7 = vsel %vm816_vm7, 0.0, %v1982_v5 }
 0xb4d   : >> { %v1989_v54 = vsel %vm818_vm8, %v1987_v7, 0.0 }
 0xb4e   : >> { %2836 = vst.msk [vmem:[%s2670_s15 + $0x20] sm:$0xff] %vm503_vm1, %v1989_v54  ;;  %1359 = sbr.rel (!%p1357_p8) target bundleno = 1870 (0x74e), region = 200 }
 0xb4f   : >> { %v1984_v55 = vpop.permute.xlu0 %1983 }
 0xb50   : >> { %v1988_v56 = vsel %vm816_vm7, 0.0, %v1984_v55 }
 0xb51   : >> { %v1990_v57 = vsel %vm818_vm8, %v1988_v56, 0.0 }
 0xb52   : >> { %2837 = vst.msk [vmem:[%s2670_s15 + $0x28] sm:$0xff] %vm503_vm1, %v1990_v57 }
 0xb53 LB: >> { %s2838_s17 = sshll.u32 %s3554_s29, 4  ;;  %s3581_s28 = smov 1   ;;  %v3583_v8 = vmov 0.0   ;;  %vm3584_vm1 = vmmov 0   ;;  %v2016_v34 = vld [vmem:[%s4396_s9] sm:$0xf]  ;;  %s3554_s29 = sphi %s4257_s29, %s2001_s29  }
 0xb54   : >> { %s4263_s18 = scalar_lea.vmem [#allocation5], %s2838_s17  ;;  %s3582_s19 = smov 127   ;;  %3148 = vmatprep.subr.bf16.mxu0 %v3583_v8  ;;  %3160 = vmatprep.subr.bf16.mxu1 %v3583_v8  ;;  %vm2057_vm10 = vcmask 523264   ;;  %v2017_v40 = vld [vmem:[%s4396_s9 + $0x4] sm:$0xf]  ;;  %v2220_v45 = vsel %vm573_vm11, %v3800_v12, 0 }
 0xb55   : >> { %3156 = vmatprep.mubr.msk.bf16.mxu0 %vm3584_vm1, %v3583_v8  ;;  %3168 = vmatprep.mubr.msk.bf16.mxu1 %vm3584_vm1, %v3583_v8  ;;  %v2174_v46 = vsel %vm573_vm11, %v3811_v16, 0  ;;  %v2020_v47 = vld [vmem:[%s4397_s10] sm:$0xff]  ;;  %v3585_v48 = vmov 0   ;;  %s2872_s20 = sshll.u32 %s3554_s29, 2  ;;  %vm2532_vm12 = vcmask 123904   ;;  %s2001_s29 = sadd.s32 1, %s3554_s29  }
 0xb56   : >> { %3506 = vset.pattern.permute.xlu1 %v3585_v48  ;;  %3507 = vset.pattern.permute.xlu0 %v3585_v48  ;;  %s2531_s21 = scalar_lea.vmem %s3773_s16, %s2872_s20  ;;  %p1998_p9 = scmp.ge.s32.totalorder %s2001_s29, 8  }
 0xb59   : >> { %v2004_v58 = vld [vmem:[%s4263_s18] sm:$0xff]  ;;  %v2005_v59 = vld [vmem:[%s4263_s18 + $0x8] sm:$0xff]  ;;  %v2840_v60 = vld [vmem:[%s4263_s18 + $0x10] sm:$0xff] }
 0xb5a   : >> { %v3476_v61 = vpack.i.bf16 %v2005_v59, %v2004_v58  ;;  %v2841_v62 = vld [vmem:[%s4263_s18 + $0x18] sm:$0xff]  ;;  %v2039_v63 = vpack.c.bf16 %v2005_v59, %v2004_v58  ;;  %v2843_v26 = vld [vmem:[%s4263_s18 + $0x20] sm:$0xff]  ;;  %v2844_v39 = vld [vmem:[%s4263_s18 + $0x28] sm:$0xff] }
 0xb5b   : >> { %v3486_v0 = vpack.i.bf16 %v2841_v62, %v2840_v60  ;;  %v2037_v1 = vpack.c.bf16 %v2841_v62, %v2840_v60  ;;  %v3496_v27 = vpack.i.bf16 %v2844_v39, %v2843_v26  ;;  %v2277_v43 = vpack.c.bf16 %v2844_v39, %v2843_v26  ;;  %v2019_v58 = vld [vmem:[%s4396_s9 + $0xc] sm:$0xf]  ;;  %v2018_v59 = vld [vmem:[%s4396_s9 + $0x8] sm:$0xf] }
 0xb5c   : >> { %3477 = vrot.lane.b32.xlu0 %v3476_v61, %s3581_s28 }
 0xb5d   : >> { %3487 = vrot.lane.b32.xlu1 %v3486_v0, %s3581_s28 }
 0xb60   : >> { %3482 = vrot.lane.b32.xlu0 %v3476_v61, %s3582_s19 }
 0xb61   : >> { %3492 = vrot.lane.b32.xlu1 %v3486_v0, %s3582_s19 }
 0xbce   : >> { %v3478_v11 = vpop.permute.xlu0 %3477 }
 0xbcf   : >> { %v3480_v13 = vunpack.i.h.bf16 %v3478_v11  ;;  %v3479_v14 = vunpack.i.l.bf16 %v3478_v11  ;;  %v3488_v3 = vpop.permute.xlu1 %3487 }
 0xbd0   : >> { %v3490_v18 = vunpack.i.h.bf16 %v3488_v3  ;;  %v3489_v19 = vunpack.i.l.bf16 %v3488_v3 }
 0xbd1   : >> { %v2040_v6 = vpack.c.bf16 %v3480_v13, %v3479_v14 }
 0xbd2   : >> { %v3483_v9 = vpop.permute.xlu0 %3482  ;;  %v2038_v24 = vpack.c.bf16 %v3490_v18, %v3489_v19 }
 0xbd3   : >> { %v3485_v10 = vunpack.i.h.bf16 %v3483_v9  ;;  %v3484_v15 = vunpack.i.l.bf16 %v3483_v9  ;;  %2051 = vrot.lane.b32.xlu0 %v2040_v6, %s3582_s19  ;;  %v3493_v20 = vpop.permute.xlu1 %3492 }
 0xbd4   : >> { %v3495_v21 = vunpack.i.h.bf16 %v3493_v20  ;;  %v3494_v22 = vunpack.i.l.bf16 %v3493_v20 }
 0xbd5   : >> { %v2114_v23 = vpack.c.bf16 %v3485_v10, %v3484_v15 }
 0xbd6   : >> { %v2113_v25 = vpack.c.bf16 %v3495_v21, %v3494_v22 }
 0xbd7   : >> { %2119 = vrot.lane.b32.xlu1 %v2114_v23, %s3582_s19  ;;  %2049 = vrot.lane.b32.xlu0 %v2039_v63, %s3582_s19 }
 0xbdb   : >> { %2047 = vrot.lane.b32.xlu1 %v2038_v24, %s3582_s19  ;;  %2117 = vrot.lane.b32.xlu0 %v2113_v25, %s3582_s19 }
 0xbdf   : >> { %2045 = vrot.lane.b32.xlu1 %v2037_v1, %s3582_s19  ;;  %3497 = vrot.lane.b32.xlu0 %v3496_v27, %s3581_s28 }
 0xbe3   : >> { %3502 = vrot.lane.b32.xlu1 %v3496_v27, %s3582_s19  ;;  %v2474_v27 = vld [vmem:[%s4398_s11] sm:$0x1] }
 0xc45   : >> { %v2052_v28 = vpop.permute.xlu0 %2051 }
 0xc46   : >> { %3149 = vmatpush3.bf16.msra.mxu0 %v2052_v28  ;;  %v2475_v28 = vld [vmem:[%s4399_s12] sm:$0x3] }
 0xc47   : >> { %3150 = vmatprep.subr.bf16.mxu0 %v3583_v8 }
 0xc49   : >> { %v2120_v29 = vpop.permute.xlu1 %2119  ;;  %v2050_v30 = vpop.permute.xlu0 %2049 }
 0xc4a   : >> { %3151 = vmatpush3.bf16.msra.mxu0 %v2050_v30  ;;  %3161 = vmatpush3.bf16.msra.mxu1 %v2120_v29 }
 0xc4b   : >> { %3162 = vmatprep.subr.bf16.mxu1 %v3583_v8  ;;  %3152 = vmatprep.subr.bf16.mxu0 %v3583_v8 }
 0xc4d   : >> { %v4292_v31 = vpop.permute.xlu1 %2047  ;;  %v4294_v32 = vpop.permute.xlu0 %2117 }
 0xc4e   : >> { %3153 = vmatpush3.bf16.msra.mxu0 %v4292_v31  ;;  %3163 = vmatpush3.bf16.msra.mxu1 %v2050_v30 }
 0xc4f   : >> { %3154 = vmatprep.subr.bf16.mxu0 %v3583_v8  ;;  %3164 = vmatprep.subr.bf16.mxu1 %v3583_v8 }
 0xc51   : >> { %v4299_v17 = vpop.permute.xlu1 %2045  ;;  %v3498_v33 = vpop.permute.xlu0 %3497 }
 0xc52   : >> { %3155 = vmatpush3.bf16.msra.mxu0 %v4299_v17  ;;  %3165 = vmatpush3.bf16.msra.mxu1 %v4294_v32  ;;  %v3500_v35 = vunpack.i.h.bf16 %v3498_v33  ;;  %v3499_v36 = vunpack.i.l.bf16 %v3498_v33 }
 0xc53   : >> { %3166 = vmatprep.subr.bf16.mxu1 %v3583_v8  ;;  %3172 = vmatprep.subr.bf16.mxu0 %v3583_v8 }
 0xc54   : >> { %v2278_v37 = vpack.c.bf16 %v3500_v35, %v3499_v36 }
 0xc55   : >> { %3157 = vmatmul.mubr.msk.bf16.vlgmr.msra.gmra.mxu0 %vm2057_vm10, %v2016_v34  ;;  %v3503_v38 = vpop.permute.xlu1 %3502 }
 0xc56   : >> { %3167 = vmatpush3.bf16.msra.mxu1 %v4299_v17  ;;  %v3505_v41 = vunpack.i.h.bf16 %v3503_v38  ;;  %v3504_v42 = vunpack.i.l.bf16 %v3503_v38  ;;  %2283 = vrot.lane.b32.xlu0 %v2278_v37, %s3582_s19 }
 0xc57   : >> { %3178 = vmatprep.subr.bf16.mxu1 %v3583_v8  ;;  %3174 = vmatprep.mubr.msk.bf16.mxu0 %vm3584_vm1, %v3583_v8 }
 0xc58   : >> { %v2336_v44 = vpack.c.bf16 %v3505_v41, %v3504_v42  ;;  %3173 = vmatpush3.bf16.msra.mxu0 %v2174_v46 }
 0xc59   : >> { %3169 = vmatmul.mubr.msk.bf16.vlgmr.msra.gmra.mxu1 %vm2057_vm10, %v2017_v40  ;;  %3184 = vmatprep.subr.bf16.mxu0 %v3583_v8 }
 0xc5a   : >> { %2338 = vrot.lane.b32.xlu1 %v2336_v44, %s3582_s19  ;;  %2281 = vrot.lane.b32.xlu0 %v2277_v43, %s3582_s19 }
 0xc5b   : >> { %3179 = vmatpush3.bf16.msra.mxu1 %v2220_v45  ;;  %3180 = vmatprep.mubr.msk.bf16.mxu1 %vm3584_vm1, %v3583_v8 }
 0xc5c   : >> { %3196 = vmatprep.subr.bf16.mxu1 %v3583_v8 }
 0xc5e   : >> { %2264 = vperm.xlu1 %3506, %v2020_v47   ;;  %2479 = vperm.xlu0 %3507, %v2475_v28  }
 0xcc8   : >> { %v2284_v49 = vpop.permute.xlu0 %2283 }
 0xccc   : >> { %v2339_v52 = vpop.permute.xlu1 %2338  ;;  %v2282_v7 = vpop.permute.xlu0 %2281 }
 0xcd9   : >> { %v2265_v62 = vpop.permute.xlu1 %2264 }
 0xd15   : >> { %v2095_v50 = vpop.f32.mrf.mxu0 }
 0xd16   : >> { %v2166_v51 = vpack.c.bf16 %v2095_v50, %v2095_v50 }
 0xd17   : >> { %v3158_v53 = vpop.f32.mrf.mxu0 }
 0xd18   : >> { %3181 = vmatmul.mubr.msk.bf16.vlgmr.msra.gmra.mxu1 %vm994_vm5, %v2166_v51 }
 0xd19   : >> { %3197 = vmatpush3.bf16.msra.mxu1 %v2339_v52  ;;  %v2098_v2 = vpop.f32.mrf.mxu0  ;;  %v2160_v4 = vpop.f32.mrf.mxu1  ;;  %3204 = vmatprep.mubr.msk.bf16.mxu1 %vm3584_vm1, %v3583_v8 }
 0xd1a   : >> { %v2167_v5 = vpack.c.bf16 %v2160_v4, %v2160_v4  ;;  %3198 = vmatprep.subr.bf16.mxu1 %v3583_v8 }
 0xd1b   : >> { %v3159_v54 = vpop.f32.mrf.mxu0  ;;  %v3170_v55 = vpop.f32.mrf.mxu1 }
 0xd1c   : >> { %3175 = vmatmul.mubr.msk.bf16.vlgmr.msra.gmra.mxu0 %vm994_vm5, %v2167_v5 }
 0xd1d   : >> { %3185 = vmatpush3.bf16.msra.mxu0 %v2284_v49  ;;  %3199 = vmatpush3.bf16.msra.mxu1 %v2282_v7  ;;  %v2163_v56 = vpop.f32.mrf.mxu1 }
 0xd1e   : >> { %3186 = vmatprep.subr.bf16.mxu0 %v3583_v8  ;;  %3200 = vmatprep.subr.bf16.mxu1 %v3583_v8 }
 0xd1f   : >> { %v3171_v57 = vpop.f32.mrf.mxu1  ;;  %3192 = vmatprep.mubr.msk.bf16.mxu0 %vm3584_vm1, %v3583_v8 }
 0xd21   : >> { %3187 = vmatpush3.bf16.msra.mxu0 %v2282_v7  ;;  %3201 = vmatpush3.bf16.msra.mxu1 %v4294_v32 }
 0xd22   : >> { %3188 = vmatprep.subr.bf16.mxu0 %v3583_v8  ;;  %3202 = vmatprep.subr.bf16.mxu1 %v3583_v8 }
 0xd25   : >> { %3189 = vmatpush3.bf16.msra.mxu0 %v4292_v31  ;;  %3203 = vmatpush3.bf16.msra.mxu1 %v4299_v17 }
 0xd26   : >> { %3190 = vmatprep.subr.bf16.mxu0 %v3583_v8  ;;  %3214 = vmatprep.subr.bf16.mxu1 %v3583_v8 }
 0xd28   : >> { %3205 = vmatmul.mubr.msk.bf16.vlgmr.msra.gmra.mxu1 %vm2057_vm10, %v2019_v58 }
 0xd29   : >> { %3191 = vmatpush3.bf16.msra.mxu0 %v4299_v17  ;;  %3215 = vmatpush3.bf16.msra.mxu1 %v2220_v45  ;;  %v2480_v45 = vpop.permute.xlu0 %2479 }
 0xd2a   : >> { %3208 = vmatprep.subr.bf16.mxu0 %v3583_v8  ;;  %3216 = vmatprep.mubr.msk.bf16.mxu1 %vm3584_vm1, %v3583_v8 }
 0xd2b   : >> { %3226 = vmatprep.subr.bf16.mxu1 %v3583_v8 }
 0xd2c   : >> { %3193 = vmatmul.mubr.msk.bf16.vlgmr.msra.gmra.mxu0 %vm2057_vm10, %v2018_v59 }
 0xd2d   : >> { %3209 = vmatpush3.bf16.msra.mxu0 %v2174_v46  ;;  %3210 = vmatprep.mubr.msk.bf16.mxu0 %vm3584_vm1, %v3583_v8 }
 0xd2e   : >> { %3220 = vmatprep.subr.bf16.mxu0 %v3583_v8 }
 0xdd8   : >> { %v2256_v60 = vpop.f32.mrf.mxu1 }
 0xdda   : >> { %v3182_v61 = vpop.f32.mrf.mxu1 }
 0xddc   : >> { %v2210_v63 = vpop.f32.mrf.mxu0  ;;  %v2259_v0 = vpop.f32.mrf.mxu1 }
 0xddd   : >> { %v2257_v1 = vadd.f32 %v2256_v60, %v2210_v63 }
 0xdde   : >> { %v3176_v11 = vpop.f32.mrf.mxu0  ;;  %v3183_v13 = vpop.f32.mrf.mxu1 }
 0xddf   : >> { %v2267_v14 = vadd.f32 %v2265_v62, %v2257_v1 }
 0xde0   : >> { %v2213_v3 = vpop.f32.mrf.mxu0 }
 0xde1   : >> { %v2268_v9 = vmax.f32 %v2267_v14, 0.0 }
 0xde2   : >> { %v3177_v6 = vpop.f32.mrf.mxu0 }
 0xde3   : >> { %v2476_v10 = vpack.c.bf16 %v2268_v9, %v2268_v9 }
 0xde5   : >> { %v2486_v20 = vsel %vm573_vm11, %v2476_v10, 0 }
 0xde8   : >> { %v2378_v15 = vpop.f32.mrf.mxu1 }
 0xde9   : >> { %v2385_v18 = vpack.c.bf16 %v2378_v15, %v2378_v15 }
 0xdea   : >> { %v3206_v19 = vpop.f32.mrf.mxu1 }
 0xdeb   : >> { %3211 = vmatmul.mubr.msk.bf16.vlgmr.msra.gmra.mxu0 %vm994_vm5, %v2385_v18 }
 0xdec   : >> { %3221 = vmatpush3.bf16.msra.mxu0 %v2486_v20  ;;  %v2324_v21 = vpop.f32.mrf.mxu0  ;;  %v2381_v22 = vpop.f32.mrf.mxu1  ;;  %3222 = vmatprep.mubr.msk.bf16.mxu0 %vm3584_vm1, %v3583_v8 }
 0xded   : >> { %v2384_v23 = vpack.c.bf16 %v2324_v21, %v2324_v21 }
 0xdee   : >> { %v3194_v24 = vpop.f32.mrf.mxu0  ;;  %v3207_v25 = vpop.f32.mrf.mxu1 }
 0xdef   : >> { %3217 = vmatmul.mubr.msk.bf16.vlgmr.msra.gmra.mxu1 %vm994_vm5, %v2384_v23 }
 0xdf0   : >> { %v2327_v26 = vpop.f32.mrf.mxu0  ;;  %3228 = vmatprep.mubr.msk.bf16.mxu1 %vm3584_vm1, %v3583_v8 }
 0xdf2   : >> { %v3195_v39 = vpop.f32.mrf.mxu0 }
 0xdf3   : >> { %3223 = vmatmul.mubr.msk.bf16.vlgmr.msra.gmra.mxu0 %vm994_vm5, %v2474_v27 }
 0xeab   : >> { %v2423_v29 = vpop.f32.mrf.mxu0 }
 0xead   : >> { %v3212_v30 = vpop.f32.mrf.mxu0 }
 0xeaf   : >> { %v2426_v31 = vpop.f32.mrf.mxu0  ;;  %v2466_v32 = vpop.f32.mrf.mxu1 }
 0xeb0   : >> { %v2467_v17 = vadd.f32 %v2466_v32, %v2423_v29 }
 0xeb1   : >> { %v3213_v33 = vpop.f32.mrf.mxu0  ;;  %v3218_v8 = vpop.f32.mrf.mxu1 }
 0xeb2   : >> { %v2472_v34 = vadd.f32 %v2467_v17, %v2265_v62 }
 0xeb3   : >> { %v2469_v35 = vpop.f32.mrf.mxu1  ;;  %v2522_v41 = vpop.f32.mrf.mxu0 }
 0xeb4   : >> { %v2473_v36 = vmax.f32 %v2472_v34, 0.0  ;;  %v2523_v46 = vadd.f32 %v2522_v41, %v2480_v45 }
 0xeb5   : >> { %v3219_v37 = vpop.f32.mrf.mxu1  ;;  %v3224_v42 = vpop.f32.mrf.mxu0 }
 0xeb6   : >> { %v2534_v38 = vpack.c.bf16 %v2473_v36, %v2473_v36  ;;  %v2528_v47 = vmax.f32 %v2523_v46, 0.0 }
 0xeb7   : >> { %v2525_v43 = vpop.f32.mrf.mxu0 }
 0xeb8   : >> { %v2536_v40 = vsel %vm573_vm11, %v2534_v38, 0  ;;  %2533 = vst.msk [vmem:[%s2531_s21] sm:$0x3] %vm2532_vm12, %v2528_v47 }
 0xeb9   : >> { %3227 = vmatpush3.bf16.msra.mxu1 %v2536_v40  ;;  %v3225_v44 = vpop.f32.mrf.mxu0 }
 0xebc   : >> { %3229 = vmatmul.mubr.msk.bf16.vlgmr.msra.gmra.mxu1 %vm994_vm5, %v2474_v27 }
 0xf7c   : >> { %v2572_v48 = vpop.f32.mrf.mxu1 }
 0xf7d   : >> { %v2573_v49 = vadd.f32 %v2572_v48, %v2480_v45 }
 0xf7e   : >> { %v3230_v50 = vpop.f32.mrf.mxu1  ;;  %2000 = sbr.rel (!%p1998_p9) target bundleno = 2899 (0xb53), region = 211 }
 0xf7f   : >> { %v2578_v51 = vmax.f32 %v2573_v49, 0.0 }
 0xf80   : >> { %v2575_v52 = vpop.f32.mrf.mxu1 }
 0xf81   : >> { %2859 = vst.msk [vmem:[%s2531_s21 + $0x2] sm:$0x3] %vm2532_vm12, %v2578_v51 }
 0xf82   : >> { %v3231_v53 = vpop.f32.mrf.mxu1 }
 0xf83 PF: > { %s23_s25 = sadd.s32 1, %s3534_s25  }
 0xf84   : > { %p20_p10 = scmp.ge.s32.totalorder %s23_s25, 4  }
 0xf86   :  { %22 = sbr.rel (!%p20_p10) target bundleno = 1 (0x1), region = 222 }

</bundles_post_ra>
